<compile_context>
chip_gen: v7x
topology: tpu7x:2x2x1
jax: 0.10.0
libtpu: 0.0.40
codegen_flags: <defaults>
</compile_context>

<pallas_src>
import functools

import jax
import jax.numpy as jnp
import numpy as np
from jax import lax
from jax.experimental import pallas as pl
from jax.experimental.pallas import tpu as pltpu


# --------------------------------------------------------------------------
# Fused kernel: per batch b ->
#   dual-GRU (final hidden only) -> 2x GCN on last-timestep slabs -> fused FC
# --------------------------------------------------------------------------
def _fused_kernel(a_ref, x_ref, wi_ref, bi_ref, wh_ref, bh_ref,
                  thgg_ref, thgc_ref, fcw_ref, fcb_ref, o_ref,
                  *, T, V, H, OC, OUT):
    H2 = 2 * H

    x_b = x_ref[0]                                     # (T*V, C)  bf16
    a = a_ref[...]                                     # (V, V)    bf16

    # Hoisted input projection for BOTH GRUs (gate-interleaved columns
    # [r1 r2 | z1 z2 | n1 n2]); one lane-dense matmul instead of T tiny ones.
    gi_all = jnp.dot(x_b, wi_ref[...],
                     preferred_element_type=jnp.float32) + bi_ref[...]  # (T*V, 6H)
    bh = bh_ref[...]                                   # (1, 6H) f32

    def sigmoid(v):
        # exp + approximate reciprocal both issue on the EUP slot.
        return pl.reciprocal(1.0 + jnp.exp(-v), approx=True)

    # Fused dual-GRU recurrence, fully unrolled (T static). State = [h1 | h2].
    h_cat = jnp.zeros((V, H2), jnp.float32)
    for t in range(T):
        gi = gi_all[t * V:(t + 1) * V, :]              # (V, 6H) static slice
        gh = jnp.dot(h_cat.astype(jnp.bfloat16), wh_ref[...],
                     preferred_element_type=jnp.float32) + bh
        r = sigmoid(gi[:, :H2] + gh[:, :H2])
        z = sigmoid(gi[:, H2:2 * H2] + gh[:, H2:2 * H2])
        n = jnp.tanh(gi[:, 2 * H2:] + r * gh[:, 2 * H2:])   # PyTorch GRU: r*(W_hn h + b_hn)
        h_cat = (1.0 - z) * n + z * h_cat

    h1 = h_cat[:, :H]                                  # gru of gru_gcn branch
    h2 = h_cat[:, H:]                                  # gru_unit branch output

    # Branch 1 (gru_gcn): GCN only on the final hidden state (== last timestep).
    ax1 = jnp.dot(a, h1.astype(jnp.bfloat16), preferred_element_type=jnp.float32)
    gcn1 = jnp.maximum(
        jnp.dot(ax1.astype(jnp.bfloat16), thgg_ref[...],
                preferred_element_type=jnp.float32), 0.0)

    # Branch 3 (gcn_unit): GCN only on the last-timestep slab of x.
    x_last = x_b[(T - 1) * V:, :]                      # (V, C) bf16
    ax3 = jnp.dot(a, x_last, preferred_element_type=jnp.float32)
    gcn3 = jnp.maximum(
        jnp.dot(ax3.astype(jnp.bfloat16), thgc_ref[...],
                preferred_element_type=jnp.float32), 0.0)

    # Fused FC heads. Concat order of the module is [gru_gcn, gru, gcn]; we
    # split the (OC+H+OC, 2*OUT) weight by row blocks to avoid a lane concat.
    fcw = fcw_ref[...]                                 # bf16
    out = (jnp.dot(gcn1.astype(jnp.bfloat16), fcw[:OC, :],
                   preferred_element_type=jnp.float32)
           + jnp.dot(h2.astype(jnp.bfloat16), fcw[OC:OC + H, :],
                     preferred_element_type=jnp.float32)
           + jnp.dot(gcn3.astype(jnp.bfloat16), fcw[OC + H:, :],
                     preferred_element_type=jnp.float32)
           + fcb_ref[...])
    o_ref[0] = out                                     # (V, 2*OUT) f32


# --------------------------------------------------------------------------
# One-time parameter packing (gate interleave + block-diag hidden weights +
# fused FC heads + bf16 casts). Done outside the jitted forward.
# --------------------------------------------------------------------------
def pack_params(params):
    H = params["gru1_wh"].shape[0]
    bf16 = jnp.bfloat16

    def interleave(w1, w2):
        # columns [r|z|n] per GRU  ->  [r1 r2 | z1 z2 | n1 n2]
        return jnp.concatenate(
            [w1[..., 0:H], w2[..., 0:H],
             w1[..., H:2 * H], w2[..., H:2 * H],
             w1[..., 2 * H:], w2[..., 2 * H:]], axis=-1)

    wi_cat = interleave(params["gru1_wi"], params["gru2_wi"])          # (C, 6H)
    bi_cat = interleave(params["gru1_b"][0:1], params["gru2_b"][0:1])  # (1, 6H)
    bh_cat = interleave(params["gru1_b"][1:2], params["gru2_b"][1:2])  # (1, 6H)

    wh1, wh2 = params["gru1_wh"], params["gru2_wh"]
    zz = jnp.zeros((H, H), jnp.float32)
    wh_bd = jnp.concatenate([
        jnp.concatenate([wh1[:, :H], zz, wh1[:, H:2 * H], zz, wh1[:, 2 * H:], zz], axis=1),
        jnp.concatenate([zz, wh2[:, :H], zz, wh2[:, H:2 * H], zz, wh2[:, 2 * H:]], axis=1),
    ], axis=0)                                                         # (2H, 6H)

    fc_w = jnp.concatenate([params["fc1_w"], params["fc2_w"]], axis=1)  # (3H, 2*OUT)
    fc_b = jnp.concatenate([params["fc1_b"], params["fc2_b"]], axis=1)  # (1, 2*OUT)

    return {
        "adj": params["adj"].astype(bf16),
        "wi_cat": wi_cat.astype(bf16),
        "bi_cat": bi_cat,
        "wh_bd": wh_bd.astype(bf16),
        "bh_cat": bh_cat,
        "theta_gg": params["gru_gcn_theta"].astype(bf16),
        "theta_gcn": params["gcn_theta"].astype(bf16),
        "fc_w": fc_w.astype(bf16),
        "fc_b": fc_b,
    }


# --------------------------------------------------------------------------
# ParalleStGcnTS forward (single pallas_call, grid over batch)
# --------------------------------------------------------------------------
def forward(x, packed):
    B, V, T, C = x.shape
    H2 = packed["wh_bd"].shape[0]
    H = H2 // 2
    OC = packed["theta_gg"].shape[1]
    OUT2 = packed["fc_w"].shape[1]
    OUT = OUT2 // 2
    G6 = 6 * H

    # Single wrapper-side layout op: (B,V,T,C) -> (B, T*V, C), bf16.
    x_flat = jnp.transpose(x, (0, 2, 1, 3)).reshape(B, T * V, C).astype(jnp.bfloat16)

    kernel = functools.partial(_fused_kernel, T=T, V=V, H=H, OC=OC, OUT=OUT)

    # NOTE: at larger V/B, add a BlockSpec grid over the vertex/batch axis and
    # set vmem_limit_bytes; at these sizes the per-step footprint is ~0.2 MiB.
    out = pl.pallas_call(
        kernel,
        out_shape=jax.ShapeDtypeStruct((B, V, OUT2), jnp.float32),
        grid=(B,),
        in_specs=[
            pl.BlockSpec((V, V), lambda b: (0, 0)),            # adj
            pl.BlockSpec((1, T * V, C), lambda b: (b, 0, 0)),  # x slab (per batch)
            pl.BlockSpec((C, G6), lambda b: (0, 0)),           # wi_cat
            pl.BlockSpec((1, G6), lambda b: (0, 0)),           # bi_cat
            pl.BlockSpec((H2, G6), lambda b: (0, 0)),          # wh block-diag
            pl.BlockSpec((1, G6), lambda b: (0, 0)),           # bh_cat
            pl.BlockSpec((H, OC), lambda b: (0, 0)),           # theta (gru_gcn)
            pl.BlockSpec((C, OC), lambda b: (0, 0)),           # theta (gcn)
            pl.BlockSpec((2 * OC + H, OUT2), lambda b: (0, 0)),# fused fc weights
            pl.BlockSpec((1, OUT2), lambda b: (0, 0)),         # fused fc bias
        ],
        out_specs=pl.BlockSpec((1, V, OUT2), lambda b: (b, 0, 0)),
        compiler_params=pltpu.CompilerParams(
            dimension_semantics=("parallel",)),  # 2-way megacore split on v7x
    )(packed["adj"], x_flat, packed["wi_cat"], packed["bi_cat"],
      packed["wh_bd"], packed["bh_cat"], packed["theta_gg"],
      packed["theta_gcn"], packed["fc_w"], packed["fc_b"])

    out = out.reshape(B * V, OUT2)
    # TODO(synk): the reference's `self.att = GCN(att_input_size=..., ...)` is not
    # constructible with the provided GCN class; treated as identity passthrough.
    return out[:, :OUT], out[:, OUT:]


# --------------------------------------------------------------------------
# Pure-JAX reference (full, un-pruned math, HIGHEST precision) for checking.
# --------------------------------------------------------------------------
def reference(x, params):
    B, V, T, C = x.shape
    A = params["adj"]
    H = params["gru1_wh"].shape[0]
    hp = lax.Precision.HIGHEST

    def gru_ref(x_ntc, wi, wh, b):
        N = x_ntc.shape[0]
        h = jnp.zeros((N, H), jnp.float32)
        outs = []
        for t in range(T):
            gi = jnp.dot(x_ntc[:, t, :], wi, precision=hp) + b[0]
            gh = jnp.dot(h, wh, precision=hp) + b[1]
            r = jax.nn.sigmoid(gi[:, :H] + gh[:, :H])
            z = jax.nn.sigmoid(gi[:, H:2 * H] + gh[:, H:2 * H])
            n = jnp.tanh(gi[:, 2 * H:] + r * gh[:, 2 * H:])
            h = (1.0 - z) * n + z * h
            outs.append(h)
        return jnp.stack(outs, axis=1)                           # (N, T, H)

    def gcn_ref(xin, w):
        Cin = xin.shape[-1]
        xr = jnp.transpose(xin, (0, 2, 1, 3)).reshape(-1, V, Cin)
        y = jnp.einsum("uv,bvc->buc", A, xr, precision=hp)
        y = jnp.maximum(jnp.einsum("buc,cd->bud", y, w, precision=hp), 0.0)
        return jnp.transpose(y.reshape(B, T, V, -1), (0, 2, 1, 3))

    x_n = x.reshape(B * V, T, C)
    gru1 = gru_ref(x_n, params["gru1_wi"], params["gru1_wh"],
                   params["gru1_b"]).reshape(B, V, T, H)
    gru_gcn_out = gcn_ref(gru1, params["gru_gcn_theta"])[:, :, -1, :]

    gru2 = gru_ref(x_n, params["gru2_wi"], params["gru2_wh"], params["gru2_b"])
    gru_out = gru2[:, -1, :].reshape(B, V, H)

    gcn_out = gcn_ref(x, params["gcn_theta"])[:, :, -1, :]

    concat = jnp.concatenate([gru_gcn_out, gru_out, gcn_out], axis=-1)
    concat = concat.reshape(-1, 3 * H)
    out1 = jnp.dot(concat, params["fc1_w"], precision=hp) + params["fc1_b"]
    out2 = jnp.dot(concat, params["fc2_w"], precision=hp) + params["fc2_b"]
    return out1, out2


if __name__ == "__main__":
    # Small, module-consistent shapes.
    B, V, T, C = 2, 16, 8, 4      # batch, vertices, timesteps, in_channels
    H = 32                        # hidden_size
    OC = 32                       # out_channels (module's concat_size = 3*H implies OC == H)
    OUT = 8                       # output_size

    key = jax.random.PRNGKey(0)
    ks = jax.random.split(key, 12)

    def init(k, shape, fan_in):
        return jax.random.normal(k, shape, jnp.float32) / jnp.sqrt(float(fan_in))

    # symmetric-normalized ring adjacency with self loops: D^-1/2 (I + ring) D^-1/2
    eye = jnp.eye(V, dtype=jnp.float32)
    adj = eye + jnp.roll(eye, 1, axis=0) + jnp.roll(eye, -1, axis=0)
    dinv = 1.0 / jnp.sqrt(jnp.sum(adj, axis=1))
    A = dinv[:, None] * adj * dinv[None, :]

    # Note: GCN.Theta0 and the gcn_gru branch exist in __init__ but are unused
    # in the reference forward, so no parameters are created for them.
    params = {
        "adj": A,
        # gru_gcn_unit: GRU(C -> H) then GCN.Theta (H -> OC)
        "gru1_wi": init(ks[0], (C, 3 * H), C),
        "gru1_wh": init(ks[1], (H, 3 * H), H),
        "gru1_b": init(ks[2], (2, 3 * H), H),
        "gru_gcn_theta": init(ks[3], (H, OC), H),
        # gru_unit: GRU(C -> H)
        "gru2_wi": init(ks[4], (C, 3 * H), C),
        "gru2_wh": init(ks[5], (H, 3 * H), H),
        "gru2_b": init(ks[6], (2, 3 * H), H),
        # gcn_unit: GCN.Theta (C -> OC)
        "gcn_theta": init(ks[7], (C, OC), C),
        # fc heads (weights stored pre-transposed: (in, out); bias (1, out))
        "fc1_w": init(ks[8], (3 * H, OUT), 3 * H),
        "fc1_b": init(ks[9], (1, OUT), 3 * H),
        "fc2_w": init(ks[10], (3 * H, OUT), 3 * H),
        "fc2_b": init(ks[11], (1, OUT), 3 * H),
    }

    x = jax.random.normal(jax.random.PRNGKey(42), (B, V, T, C), jnp.float32)

    packed = pack_params(params)
    fwd = jax.jit(forward)
    out1, out2 = fwd(x, packed)
    jax.block_until_ready((out1, out2))

    # Sanity check vs. pure-JAX f32 reference. Tolerance is loose because the
    # kernel uses bf16 MXU operands (f32 accumulation) through an 8-step GRU
    # recurrence; semantic bugs (gate order / packing) would show as O(1) errors.
    r1, r2 = reference(x, params)
    np.testing.assert_allclose(np.asarray(out1), np.asarray(r1), rtol=5e-2, atol=5e-2)
    np.testing.assert_allclose(np.asarray(out2), np.asarray(r2), rtol=5e-2, atol=5e-2)
    assert out1.shape == (B * V, OUT) and out2.shape == (B * V, OUT)

    print("KERNEL_OK")
</pallas_src>

<mosaic_0001>
module attributes {stable_mosaic.version = 11 : i64} {
  func.func @_fused_kernel(%arg0: i32, %arg1: memref<16x16xbf16, #tpu.memory_space<vmem>>, %arg2: memref<1x128x4xbf16, #tpu.memory_space<vmem>>, %arg3: memref<4x192xbf16, #tpu.memory_space<vmem>>, %arg4: memref<1x192xf32, #tpu.memory_space<vmem>>, %arg5: memref<64x192xbf16, #tpu.memory_space<vmem>>, %arg6: memref<1x192xf32, #tpu.memory_space<vmem>>, %arg7: memref<32x32xbf16, #tpu.memory_space<vmem>>, %arg8: memref<4x32xbf16, #tpu.memory_space<vmem>>, %arg9: memref<96x16xbf16, #tpu.memory_space<vmem>>, %arg10: memref<1x16xf32, #tpu.memory_space<vmem>>, %arg11: memref<1x16x16xf32, #tpu.memory_space<vmem>>) attributes {dimension_semantics = [#tpu.dimension_semantics<parallel>], iteration_bounds = array<i64: 2>, scalar_prefetch = 0 : i64, scratch_operands = 0 : i64, tpu.core_type = #tpu.core_type<tc>, window_params = [{pipeline_mode = #tpu.pipeline_mode<synchronous>, transform_indices = @transform_0, window_bounds = array<i64: 16, 16>}, {transform_indices = @transform_1, window_bounds = array<i64: 1, 128, 4>}, {pipeline_mode = #tpu.pipeline_mode<synchronous>, transform_indices = @transform_2, window_bounds = array<i64: 4, 192>}, {pipeline_mode = #tpu.pipeline_mode<synchronous>, transform_indices = @transform_3, window_bounds = array<i64: 1, 192>}, {pipeline_mode = #tpu.pipeline_mode<synchronous>, transform_indices = @transform_4, window_bounds = array<i64: 64, 192>}, {pipeline_mode = #tpu.pipeline_mode<synchronous>, transform_indices = @transform_5, window_bounds = array<i64: 1, 192>}, {pipeline_mode = #tpu.pipeline_mode<synchronous>, transform_indices = @transform_6, window_bounds = array<i64: 32, 32>}, {pipeline_mode = #tpu.pipeline_mode<synchronous>, transform_indices = @transform_7, window_bounds = array<i64: 4, 32>}, {pipeline_mode = #tpu.pipeline_mode<synchronous>, transform_indices = @transform_8, window_bounds = array<i64: 96, 16>}, {pipeline_mode = #tpu.pipeline_mode<synchronous>, transform_indices = @transform_9, window_bounds = array<i64: 1, 16>}, {transform_indices = @transform_10, window_bounds = array<i64: 1, 16, 16>}]} {
    %c0 = arith.constant 0 : index
    %c0_0 = arith.constant 0 : index
    %c0_1 = arith.constant 0 : index
    %0 = vector.load %arg2[%c0, %c0_0, %c0_1] : memref<1x128x4xbf16, #tpu.memory_space<vmem>>, vector<1x128x4xbf16>
    %1 = vector.shape_cast %0 : vector<1x128x4xbf16> to vector<128x4xbf16>
    %c0_2 = arith.constant 0 : index
    %c0_3 = arith.constant 0 : index
    %2 = vector.load %arg1[%c0_2, %c0_3] : memref<16x16xbf16, #tpu.memory_space<vmem>>, vector<16x16xbf16>
    %c0_4 = arith.constant 0 : index
    %c0_5 = arith.constant 0 : index
    %3 = vector.load %arg3[%c0_4, %c0_5] : memref<4x192xbf16, #tpu.memory_space<vmem>>, vector<4x192xbf16>
    %cst = arith.constant dense<0.000000e+00> : vector<128x192xf32>
    %4 = tpu.matmul %1, %3, %cst {dimension_numbers = #tpu.dot_dimension_numbers<[1], [0], [0], [1], [0, 0, 1, 1], [], []>} : vector<128x4xbf16>, vector<4x192xbf16>, vector<128x192xf32> -> vector<128x192xf32>
    %c0_6 = arith.constant 0 : index
    %c0_7 = arith.constant 0 : index
    %5 = vector.load %arg4[%c0_6, %c0_7] : memref<1x192xf32, #tpu.memory_space<vmem>>, vector<1x192xf32>
    %6 = vector.broadcast %5 : vector<1x192xf32> to vector<128x192xf32>
    %7 = arith.addf %4, %6 : vector<128x192xf32>
    %c0_8 = arith.constant 0 : index
    %c0_9 = arith.constant 0 : index
    %8 = vector.load %arg6[%c0_8, %c0_9] : memref<1x192xf32, #tpu.memory_space<vmem>>, vector<1x192xf32>
    %cst_10 = arith.constant 0.000000e+00 : f32
    %9 = vector.broadcast %cst_10 : f32 to vector<16x64xf32>
    %10 = vector.extract_strided_slice %7 {offsets = [0, 0], sizes = [16, 192], strides = [1, 1]} : vector<128x192xf32> to vector<16x192xf32>
    %11 = arith.truncf %9 : vector<16x64xf32> to vector<16x64xbf16>
    %c0_11 = arith.constant 0 : index
    %c0_12 = arith.constant 0 : index
    %12 = vector.load %arg5[%c0_11, %c0_12] : memref<64x192xbf16, #tpu.memory_space<vmem>>, vector<64x192xbf16>
    %cst_13 = arith.constant dense<0.000000e+00> : vector<16x192xf32>
    %13 = tpu.matmul %11, %12, %cst_13 {dimension_numbers = #tpu.dot_dimension_numbers<[1], [0], [0], [1], [0, 0, 1, 1], [], []>} : vector<16x64xbf16>, vector<64x192xbf16>, vector<16x192xf32> -> vector<16x192xf32>
    %14 = vector.broadcast %8 : vector<1x192xf32> to vector<16x192xf32>
    %15 = arith.addf %13, %14 : vector<16x192xf32>
    %16 = vector.extract_strided_slice %10 {offsets = [0, 0], sizes = [16, 64], strides = [1, 1]} : vector<16x192xf32> to vector<16x64xf32>
    %17 = vector.extract_strided_slice %15 {offsets = [0, 0], sizes = [16, 64], strides = [1, 1]} : vector<16x192xf32> to vector<16x64xf32>
    %18 = arith.addf %16, %17 : vector<16x64xf32>
    %cst_14 = arith.constant 0.000000e+00 : f32
    %19 = vector.broadcast %cst_14 : f32 to vector<16x64xf32>
    %20 = arith.subf %19, %18 : vector<16x64xf32>
    %21 = math.exp %20 : vector<16x64xf32>
    %cst_15 = arith.constant 1.000000e+00 : f32
    %22 = vector.broadcast %cst_15 : f32 to vector<16x64xf32>
    %23 = arith.addf %22, %21 : vector<16x64xf32>
    %24 = tpu.reciprocal %23 {approx = true} : vector<16x64xf32> -> vector<16x64xf32>
    %25 = vector.extract_strided_slice %10 {offsets = [0, 64], sizes = [16, 64], strides = [1, 1]} : vector<16x192xf32> to vector<16x64xf32>
    %26 = vector.extract_strided_slice %15 {offsets = [0, 64], sizes = [16, 64], strides = [1, 1]} : vector<16x192xf32> to vector<16x64xf32>
    %27 = arith.addf %25, %26 : vector<16x64xf32>
    %cst_16 = arith.constant 0.000000e+00 : f32
    %28 = vector.broadcast %cst_16 : f32 to vector<16x64xf32>
    %29 = arith.subf %28, %27 : vector<16x64xf32>
    %30 = math.exp %29 : vector<16x64xf32>
    %cst_17 = arith.constant 1.000000e+00 : f32
    %31 = vector.broadcast %cst_17 : f32 to vector<16x64xf32>
    %32 = arith.addf %31, %30 : vector<16x64xf32>
    %33 = tpu.reciprocal %32 {approx = true} : vector<16x64xf32> -> vector<16x64xf32>
    %34 = vector.extract_strided_slice %10 {offsets = [0, 128], sizes = [16, 64], strides = [1, 1]} : vector<16x192xf32> to vector<16x64xf32>
    %35 = vector.extract_strided_slice %15 {offsets = [0, 128], sizes = [16, 64], strides = [1, 1]} : vector<16x192xf32> to vector<16x64xf32>
    %36 = arith.mulf %24, %35 : vector<16x64xf32>
    %37 = arith.addf %34, %36 : vector<16x64xf32>
    %38 = math.tanh %37 : vector<16x64xf32>
    %cst_18 = arith.constant 1.000000e+00 : f32
    %39 = vector.broadcast %cst_18 : f32 to vector<16x64xf32>
    %40 = arith.subf %39, %33 : vector<16x64xf32>
    %41 = arith.mulf %40, %38 : vector<16x64xf32>
    %42 = arith.mulf %33, %9 : vector<16x64xf32>
    %43 = arith.addf %41, %42 : vector<16x64xf32>
    %44 = vector.extract_strided_slice %7 {offsets = [16, 0], sizes = [16, 192], strides = [1, 1]} : vector<128x192xf32> to vector<16x192xf32>
    %45 = arith.truncf %43 : vector<16x64xf32> to vector<16x64xbf16>
    %c0_19 = arith.constant 0 : index
    %c0_20 = arith.constant 0 : index
    %46 = vector.load %arg5[%c0_19, %c0_20] : memref<64x192xbf16, #tpu.memory_space<vmem>>, vector<64x192xbf16>
    %cst_21 = arith.constant dense<0.000000e+00> : vector<16x192xf32>
    %47 = tpu.matmul %45, %46, %cst_21 {dimension_numbers = #tpu.dot_dimension_numbers<[1], [0], [0], [1], [0, 0, 1, 1], [], []>} : vector<16x64xbf16>, vector<64x192xbf16>, vector<16x192xf32> -> vector<16x192xf32>
    %48 = vector.broadcast %8 : vector<1x192xf32> to vector<16x192xf32>
    %49 = arith.addf %47, %48 : vector<16x192xf32>
    %50 = vector.extract_strided_slice %44 {offsets = [0, 0], sizes = [16, 64], strides = [1, 1]} : vector<16x192xf32> to vector<16x64xf32>
    %51 = vector.extract_strided_slice %49 {offsets = [0, 0], sizes = [16, 64], strides = [1, 1]} : vector<16x192xf32> to vector<16x64xf32>
    %52 = arith.addf %50, %51 : vector<16x64xf32>
    %cst_22 = arith.constant 0.000000e+00 : f32
    %53 = vector.broadcast %cst_22 : f32 to vector<16x64xf32>
    %54 = arith.subf %53, %52 : vector<16x64xf32>
    %55 = math.exp %54 : vector<16x64xf32>
    %cst_23 = arith.constant 1.000000e+00 : f32
    %56 = vector.broadcast %cst_23 : f32 to vector<16x64xf32>
    %57 = arith.addf %56, %55 : vector<16x64xf32>
    %58 = tpu.reciprocal %57 {approx = true} : vector<16x64xf32> -> vector<16x64xf32>
    %59 = vector.extract_strided_slice %44 {offsets = [0, 64], sizes = [16, 64], strides = [1, 1]} : vector<16x192xf32> to vector<16x64xf32>
    %60 = vector.extract_strided_slice %49 {offsets = [0, 64], sizes = [16, 64], strides = [1, 1]} : vector<16x192xf32> to vector<16x64xf32>
    %61 = arith.addf %59, %60 : vector<16x64xf32>
    %cst_24 = arith.constant 0.000000e+00 : f32
    %62 = vector.broadcast %cst_24 : f32 to vector<16x64xf32>
    %63 = arith.subf %62, %61 : vector<16x64xf32>
    %64 = math.exp %63 : vector<16x64xf32>
    %cst_25 = arith.constant 1.000000e+00 : f32
    %65 = vector.broadcast %cst_25 : f32 to vector<16x64xf32>
    %66 = arith.addf %65, %64 : vector<16x64xf32>
    %67 = tpu.reciprocal %66 {approx = true} : vector<16x64xf32> -> vector<16x64xf32>
    %68 = vector.extract_strided_slice %44 {offsets = [0, 128], sizes = [16, 64], strides = [1, 1]} : vector<16x192xf32> to vector<16x64xf32>
    %69 = vector.extract_strided_slice %49 {offsets = [0, 128], sizes = [16, 64], strides = [1, 1]} : vector<16x192xf32> to vector<16x64xf32>
    %70 = arith.mulf %58, %69 : vector<16x64xf32>
    %71 = arith.addf %68, %70 : vector<16x64xf32>
    %72 = math.tanh %71 : vector<16x64xf32>
    %cst_26 = arith.constant 1.000000e+00 : f32
    %73 = vector.broadcast %cst_26 : f32 to vector<16x64xf32>
    %74 = arith.subf %73, %67 : vector<16x64xf32>
    %75 = arith.mulf %74, %72 : vector<16x64xf32>
    %76 = arith.mulf %67, %43 : vector<16x64xf32>
    %77 = arith.addf %75, %76 : vector<16x64xf32>
    %78 = vector.extract_strided_slice %7 {offsets = [32, 0], sizes = [16, 192], strides = [1, 1]} : vector<128x192xf32> to vector<16x192xf32>
    %79 = arith.truncf %77 : vector<16x64xf32> to vector<16x64xbf16>
    %c0_27 = arith.constant 0 : index
    %c0_28 = arith.constant 0 : index
    %80 = vector.load %arg5[%c0_27, %c0_28] : memref<64x192xbf16, #tpu.memory_space<vmem>>, vector<64x192xbf16>
    %cst_29 = arith.constant dense<0.000000e+00> : vector<16x192xf32>
    %81 = tpu.matmul %79, %80, %cst_29 {dimension_numbers = #tpu.dot_dimension_numbers<[1], [0], [0], [1], [0, 0, 1, 1], [], []>} : vector<16x64xbf16>, vector<64x192xbf16>, vector<16x192xf32> -> vector<16x192xf32>
    %82 = vector.broadcast %8 : vector<1x192xf32> to vector<16x192xf32>
    %83 = arith.addf %81, %82 : vector<16x192xf32>
    %84 = vector.extract_strided_slice %78 {offsets = [0, 0], sizes = [16, 64], strides = [1, 1]} : vector<16x192xf32> to vector<16x64xf32>
    %85 = vector.extract_strided_slice %83 {offsets = [0, 0], sizes = [16, 64], strides = [1, 1]} : vector<16x192xf32> to vector<16x64xf32>
    %86 = arith.addf %84, %85 : vector<16x64xf32>
    %cst_30 = arith.constant 0.000000e+00 : f32
    %87 = vector.broadcast %cst_30 : f32 to vector<16x64xf32>
    %88 = arith.subf %87, %86 : vector<16x64xf32>
    %89 = math.exp %88 : vector<16x64xf32>
    %cst_31 = arith.constant 1.000000e+00 : f32
    %90 = vector.broadcast %cst_31 : f32 to vector<16x64xf32>
    %91 = arith.addf %90, %89 : vector<16x64xf32>
    %92 = tpu.reciprocal %91 {approx = true} : vector<16x64xf32> -> vector<16x64xf32>
    %93 = vector.extract_strided_slice %78 {offsets = [0, 64], sizes = [16, 64], strides = [1, 1]} : vector<16x192xf32> to vector<16x64xf32>
    %94 = vector.extract_strided_slice %83 {offsets = [0, 64], sizes = [16, 64], strides = [1, 1]} : vector<16x192xf32> to vector<16x64xf32>
    %95 = arith.addf %93, %94 : vector<16x64xf32>
    %cst_32 = arith.constant 0.000000e+00 : f32
    %96 = vector.broadcast %cst_32 : f32 to vector<16x64xf32>
    %97 = arith.subf %96, %95 : vector<16x64xf32>
    %98 = math.exp %97 : vector<16x64xf32>
    %cst_33 = arith.constant 1.000000e+00 : f32
    %99 = vector.broadcast %cst_33 : f32 to vector<16x64xf32>
    %100 = arith.addf %99, %98 : vector<16x64xf32>
    %101 = tpu.reciprocal %100 {approx = true} : vector<16x64xf32> -> vector<16x64xf32>
    %102 = vector.extract_strided_slice %78 {offsets = [0, 128], sizes = [16, 64], strides = [1, 1]} : vector<16x192xf32> to vector<16x64xf32>
    %103 = vector.extract_strided_slice %83 {offsets = [0, 128], sizes = [16, 64], strides = [1, 1]} : vector<16x192xf32> to vector<16x64xf32>
    %104 = arith.mulf %92, %103 : vector<16x64xf32>
    %105 = arith.addf %102, %104 : vector<16x64xf32>
    %106 = math.tanh %105 : vector<16x64xf32>
    %cst_34 = arith.constant 1.000000e+00 : f32
    %107 = vector.broadcast %cst_34 : f32 to vector<16x64xf32>
    %108 = arith.subf %107, %101 : vector<16x64xf32>
    %109 = arith.mulf %108, %106 : vector<16x64xf32>
    %110 = arith.mulf %101, %77 : vector<16x64xf32>
    %111 = arith.addf %109, %110 : vector<16x64xf32>
    %112 = vector.extract_strided_slice %7 {offsets = [48, 0], sizes = [16, 192], strides = [1, 1]} : vector<128x192xf32> to vector<16x192xf32>
    %113 = arith.truncf %111 : vector<16x64xf32> to vector<16x64xbf16>
    %c0_35 = arith.constant 0 : index
    %c0_36 = arith.constant 0 : index
    %114 = vector.load %arg5[%c0_35, %c0_36] : memref<64x192xbf16, #tpu.memory_space<vmem>>, vector<64x192xbf16>
    %cst_37 = arith.constant dense<0.000000e+00> : vector<16x192xf32>
    %115 = tpu.matmul %113, %114, %cst_37 {dimension_numbers = #tpu.dot_dimension_numbers<[1], [0], [0], [1], [0, 0, 1, 1], [], []>} : vector<16x64xbf16>, vector<64x192xbf16>, vector<16x192xf32> -> vector<16x192xf32>
    %116 = vector.broadcast %8 : vector<1x192xf32> to vector<16x192xf32>
    %117 = arith.addf %115, %116 : vector<16x192xf32>
    %118 = vector.extract_strided_slice %112 {offsets = [0, 0], sizes = [16, 64], strides = [1, 1]} : vector<16x192xf32> to vector<16x64xf32>
    %119 = vector.extract_strided_slice %117 {offsets = [0, 0], sizes = [16, 64], strides = [1, 1]} : vector<16x192xf32> to vector<16x64xf32>
    %120 = arith.addf %118, %119 : vector<16x64xf32>
    %cst_38 = arith.constant 0.000000e+00 : f32
    %121 = vector.broadcast %cst_38 : f32 to vector<16x64xf32>
    %122 = arith.subf %121, %120 : vector<16x64xf32>
    %123 = math.exp %122 : vector<16x64xf32>
    %cst_39 = arith.constant 1.000000e+00 : f32
    %124 = vector.broadcast %cst_39 : f32 to vector<16x64xf32>
    %125 = arith.addf %124, %123 : vector<16x64xf32>
    %126 = tpu.reciprocal %125 {approx = true} : vector<16x64xf32> -> vector<16x64xf32>
    %127 = vector.extract_strided_slice %112 {offsets = [0, 64], sizes = [16, 64], strides = [1, 1]} : vector<16x192xf32> to vector<16x64xf32>
    %128 = vector.extract_strided_slice %117 {offsets = [0, 64], sizes = [16, 64], strides = [1, 1]} : vector<16x192xf32> to vector<16x64xf32>
    %129 = arith.addf %127, %128 : vector<16x64xf32>
    %cst_40 = arith.constant 0.000000e+00 : f32
    %130 = vector.broadcast %cst_40 : f32 to vector<16x64xf32>
    %131 = arith.subf %130, %129 : vector<16x64xf32>
    %132 = math.exp %131 : vector<16x64xf32>
    %cst_41 = arith.constant 1.000000e+00 : f32
    %133 = vector.broadcast %cst_41 : f32 to vector<16x64xf32>
    %134 = arith.addf %133, %132 : vector<16x64xf32>
    %135 = tpu.reciprocal %134 {approx = true} : vector<16x64xf32> -> vector<16x64xf32>
    %136 = vector.extract_strided_slice %112 {offsets = [0, 128], sizes = [16, 64], strides = [1, 1]} : vector<16x192xf32> to vector<16x64xf32>
    %137 = vector.extract_strided_slice %117 {offsets = [0, 128], sizes = [16, 64], strides = [1, 1]} : vector<16x192xf32> to vector<16x64xf32>
    %138 = arith.mulf %126, %137 : vector<16x64xf32>
    %139 = arith.addf %136, %138 : vector<16x64xf32>
    %140 = math.tanh %139 : vector<16x64xf32>
    %cst_42 = arith.constant 1.000000e+00 : f32
    %141 = vector.broadcast %cst_42 : f32 to vector<16x64xf32>
    %142 = arith.subf %141, %135 : vector<16x64xf32>
    %143 = arith.mulf %142, %140 : vector<16x64xf32>
    %144 = arith.mulf %135, %111 : vector<16x64xf32>
    %145 = arith.addf %143, %144 : vector<16x64xf32>
    %146 = vector.extract_strided_slice %7 {offsets = [64, 0], sizes = [16, 192], strides = [1, 1]} : vector<128x192xf32> to vector<16x192xf32>
    %147 = arith.truncf %145 : vector<16x64xf32> to vector<16x64xbf16>
    %c0_43 = arith.constant 0 : index
    %c0_44 = arith.constant 0 : index
    %148 = vector.load %arg5[%c0_43, %c0_44] : memref<64x192xbf16, #tpu.memory_space<vmem>>, vector<64x192xbf16>
    %cst_45 = arith.constant dense<0.000000e+00> : vector<16x192xf32>
    %149 = tpu.matmul %147, %148, %cst_45 {dimension_numbers = #tpu.dot_dimension_numbers<[1], [0], [0], [1], [0, 0, 1, 1], [], []>} : vector<16x64xbf16>, vector<64x192xbf16>, vector<16x192xf32> -> vector<16x192xf32>
    %150 = vector.broadcast %8 : vector<1x192xf32> to vector<16x192xf32>
    %151 = arith.addf %149, %150 : vector<16x192xf32>
    %152 = vector.extract_strided_slice %146 {offsets = [0, 0], sizes = [16, 64], strides = [1, 1]} : vector<16x192xf32> to vector<16x64xf32>
    %153 = vector.extract_strided_slice %151 {offsets = [0, 0], sizes = [16, 64], strides = [1, 1]} : vector<16x192xf32> to vector<16x64xf32>
    %154 = arith.addf %152, %153 : vector<16x64xf32>
    %cst_46 = arith.constant 0.000000e+00 : f32
    %155 = vector.broadcast %cst_46 : f32 to vector<16x64xf32>
    %156 = arith.subf %155, %154 : vector<16x64xf32>
    %157 = math.exp %156 : vector<16x64xf32>
    %cst_47 = arith.constant 1.000000e+00 : f32
    %158 = vector.broadcast %cst_47 : f32 to vector<16x64xf32>
    %159 = arith.addf %158, %157 : vector<16x64xf32>
    %160 = tpu.reciprocal %159 {approx = true} : vector<16x64xf32> -> vector<16x64xf32>
    %161 = vector.extract_strided_slice %146 {offsets = [0, 64], sizes = [16, 64], strides = [1, 1]} : vector<16x192xf32> to vector<16x64xf32>
    %162 = vector.extract_strided_slice %151 {offsets = [0, 64], sizes = [16, 64], strides = [1, 1]} : vector<16x192xf32> to vector<16x64xf32>
    %163 = arith.addf %161, %162 : vector<16x64xf32>
    %cst_48 = arith.constant 0.000000e+00 : f32
    %164 = vector.broadcast %cst_48 : f32 to vector<16x64xf32>
    %165 = arith.subf %164, %163 : vector<16x64xf32>
    %166 = math.exp %165 : vector<16x64xf32>
    %cst_49 = arith.constant 1.000000e+00 : f32
    %167 = vector.broadcast %cst_49 : f32 to vector<16x64xf32>
    %168 = arith.addf %167, %166 : vector<16x64xf32>
    %169 = tpu.reciprocal %168 {approx = true} : vector<16x64xf32> -> vector<16x64xf32>
    %170 = vector.extract_strided_slice %146 {offsets = [0, 128], sizes = [16, 64], strides = [1, 1]} : vector<16x192xf32> to vector<16x64xf32>
    %171 = vector.extract_strided_slice %151 {offsets = [0, 128], sizes = [16, 64], strides = [1, 1]} : vector<16x192xf32> to vector<16x64xf32>
    %172 = arith.mulf %160, %171 : vector<16x64xf32>
    %173 = arith.addf %170, %172 : vector<16x64xf32>
    %174 = math.tanh %173 : vector<16x64xf32>
    %cst_50 = arith.constant 1.000000e+00 : f32
    %175 = vector.broadcast %cst_50 : f32 to vector<16x64xf32>
    %176 = arith.subf %175, %169 : vector<16x64xf32>
    %177 = arith.mulf %176, %174 : vector<16x64xf32>
    %178 = arith.mulf %169, %145 : vector<16x64xf32>
    %179 = arith.addf %177, %178 : vector<16x64xf32>
    %180 = vector.extract_strided_slice %7 {offsets = [80, 0], sizes = [16, 192], strides = [1, 1]} : vector<128x192xf32> to vector<16x192xf32>
    %181 = arith.truncf %179 : vector<16x64xf32> to vector<16x64xbf16>
    %c0_51 = arith.constant 0 : index
    %c0_52 = arith.constant 0 : index
    %182 = vector.load %arg5[%c0_51, %c0_52] : memref<64x192xbf16, #tpu.memory_space<vmem>>, vector<64x192xbf16>
    %cst_53 = arith.constant dense<0.000000e+00> : vector<16x192xf32>
    %183 = tpu.matmul %181, %182, %cst_53 {dimension_numbers = #tpu.dot_dimension_numbers<[1], [0], [0], [1], [0, 0, 1, 1], [], []>} : vector<16x64xbf16>, vector<64x192xbf16>, vector<16x192xf32> -> vector<16x192xf32>
    %184 = vector.broadcast %8 : vector<1x192xf32> to vector<16x192xf32>
    %185 = arith.addf %183, %184 : vector<16x192xf32>
    %186 = vector.extract_strided_slice %180 {offsets = [0, 0], sizes = [16, 64], strides = [1, 1]} : vector<16x192xf32> to vector<16x64xf32>
    %187 = vector.extract_strided_slice %185 {offsets = [0, 0], sizes = [16, 64], strides = [1, 1]} : vector<16x192xf32> to vector<16x64xf32>
    %188 = arith.addf %186, %187 : vector<16x64xf32>
    %cst_54 = arith.constant 0.000000e+00 : f32
    %189 = vector.broadcast %cst_54 : f32 to vector<16x64xf32>
    %190 = arith.subf %189, %188 : vector<16x64xf32>
    %191 = math.exp %190 : vector<16x64xf32>
    %cst_55 = arith.constant 1.000000e+00 : f32
    %192 = vector.broadcast %cst_55 : f32 to vector<16x64xf32>
    %193 = arith.addf %192, %191 : vector<16x64xf32>
    %194 = tpu.reciprocal %193 {approx = true} : vector<16x64xf32> -> vector<16x64xf32>
    %195 = vector.extract_strided_slice %180 {offsets = [0, 64], sizes = [16, 64], strides = [1, 1]} : vector<16x192xf32> to vector<16x64xf32>
    %196 = vector.extract_strided_slice %185 {offsets = [0, 64], sizes = [16, 64], strides = [1, 1]} : vector<16x192xf32> to vector<16x64xf32>
    %197 = arith.addf %195, %196 : vector<16x64xf32>
    %cst_56 = arith.constant 0.000000e+00 : f32
    %198 = vector.broadcast %cst_56 : f32 to vector<16x64xf32>
    %199 = arith.subf %198, %197 : vector<16x64xf32>
    %200 = math.exp %199 : vector<16x64xf32>
    %cst_57 = arith.constant 1.000000e+00 : f32
    %201 = vector.broadcast %cst_57 : f32 to vector<16x64xf32>
    %202 = arith.addf %201, %200 : vector<16x64xf32>
    %203 = tpu.reciprocal %202 {approx = true} : vector<16x64xf32> -> vector<16x64xf32>
    %204 = vector.extract_strided_slice %180 {offsets = [0, 128], sizes = [16, 64], strides = [1, 1]} : vector<16x192xf32> to vector<16x64xf32>
    %205 = vector.extract_strided_slice %185 {offsets = [0, 128], sizes = [16, 64], strides = [1, 1]} : vector<16x192xf32> to vector<16x64xf32>
    %206 = arith.mulf %194, %205 : vector<16x64xf32>
    %207 = arith.addf %204, %206 : vector<16x64xf32>
    %208 = math.tanh %207 : vector<16x64xf32>
    %cst_58 = arith.constant 1.000000e+00 : f32
    %209 = vector.broadcast %cst_58 : f32 to vector<16x64xf32>
    %210 = arith.subf %209, %203 : vector<16x64xf32>
    %211 = arith.mulf %210, %208 : vector<16x64xf32>
    %212 = arith.mulf %203, %179 : vector<16x64xf32>
    %213 = arith.addf %211, %212 : vector<16x64xf32>
    %214 = vector.extract_strided_slice %7 {offsets = [96, 0], sizes = [16, 192], strides = [1, 1]} : vector<128x192xf32> to vector<16x192xf32>
    %215 = arith.truncf %213 : vector<16x64xf32> to vector<16x64xbf16>
    %c0_59 = arith.constant 0 : index
    %c0_60 = arith.constant 0 : index
    %216 = vector.load %arg5[%c0_59, %c0_60] : memref<64x192xbf16, #tpu.memory_space<vmem>>, vector<64x192xbf16>
    %cst_61 = arith.constant dense<0.000000e+00> : vector<16x192xf32>
    %217 = tpu.matmul %215, %216, %cst_61 {dimension_numbers = #tpu.dot_dimension_numbers<[1], [0], [0], [1], [0, 0, 1, 1], [], []>} : vector<16x64xbf16>, vector<64x192xbf16>, vector<16x192xf32> -> vector<16x192xf32>
    %218 = vector.broadcast %8 : vector<1x192xf32> to vector<16x192xf32>
    %219 = arith.addf %217, %218 : vector<16x192xf32>
    %220 = vector.extract_strided_slice %214 {offsets = [0, 0], sizes = [16, 64], strides = [1, 1]} : vector<16x192xf32> to vector<16x64xf32>
    %221 = vector.extract_strided_slice %219 {offsets = [0, 0], sizes = [16, 64], strides = [1, 1]} : vector<16x192xf32> to vector<16x64xf32>
    %222 = arith.addf %220, %221 : vector<16x64xf32>
    %cst_62 = arith.constant 0.000000e+00 : f32
    %223 = vector.broadcast %cst_62 : f32 to vector<16x64xf32>
    %224 = arith.subf %223, %222 : vector<16x64xf32>
    %225 = math.exp %224 : vector<16x64xf32>
    %cst_63 = arith.constant 1.000000e+00 : f32
    %226 = vector.broadcast %cst_63 : f32 to vector<16x64xf32>
    %227 = arith.addf %226, %225 : vector<16x64xf32>
    %228 = tpu.reciprocal %227 {approx = true} : vector<16x64xf32> -> vector<16x64xf32>
    %229 = vector.extract_strided_slice %214 {offsets = [0, 64], sizes = [16, 64], strides = [1, 1]} : vector<16x192xf32> to vector<16x64xf32>
    %230 = vector.extract_strided_slice %219 {offsets = [0, 64], sizes = [16, 64], strides = [1, 1]} : vector<16x192xf32> to vector<16x64xf32>
    %231 = arith.addf %229, %230 : vector<16x64xf32>
    %cst_64 = arith.constant 0.000000e+00 : f32
    %232 = vector.broadcast %cst_64 : f32 to vector<16x64xf32>
    %233 = arith.subf %232, %231 : vector<16x64xf32>
    %234 = math.exp %233 : vector<16x64xf32>
    %cst_65 = arith.constant 1.000000e+00 : f32
    %235 = vector.broadcast %cst_65 : f32 to vector<16x64xf32>
    %236 = arith.addf %235, %234 : vector<16x64xf32>
    %237 = tpu.reciprocal %236 {approx = true} : vector<16x64xf32> -> vector<16x64xf32>
    %238 = vector.extract_strided_slice %214 {offsets = [0, 128], sizes = [16, 64], strides = [1, 1]} : vector<16x192xf32> to vector<16x64xf32>
    %239 = vector.extract_strided_slice %219 {offsets = [0, 128], sizes = [16, 64], strides = [1, 1]} : vector<16x192xf32> to vector<16x64xf32>
    %240 = arith.mulf %228, %239 : vector<16x64xf32>
    %241 = arith.addf %238, %240 : vector<16x64xf32>
    %242 = math.tanh %241 : vector<16x64xf32>
    %cst_66 = arith.constant 1.000000e+00 : f32
    %243 = vector.broadcast %cst_66 : f32 to vector<16x64xf32>
    %244 = arith.subf %243, %237 : vector<16x64xf32>
    %245 = arith.mulf %244, %242 : vector<16x64xf32>
    %246 = arith.mulf %237, %213 : vector<16x64xf32>
    %247 = arith.addf %245, %246 : vector<16x64xf32>
    %248 = vector.extract_strided_slice %7 {offsets = [112, 0], sizes = [16, 192], strides = [1, 1]} : vector<128x192xf32> to vector<16x192xf32>
    %249 = arith.truncf %247 : vector<16x64xf32> to vector<16x64xbf16>
    %c0_67 = arith.constant 0 : index
    %c0_68 = arith.constant 0 : index
    %250 = vector.load %arg5[%c0_67, %c0_68] : memref<64x192xbf16, #tpu.memory_space<vmem>>, vector<64x192xbf16>
    %cst_69 = arith.constant dense<0.000000e+00> : vector<16x192xf32>
    %251 = tpu.matmul %249, %250, %cst_69 {dimension_numbers = #tpu.dot_dimension_numbers<[1], [0], [0], [1], [0, 0, 1, 1], [], []>} : vector<16x64xbf16>, vector<64x192xbf16>, vector<16x192xf32> -> vector<16x192xf32>
    %252 = vector.broadcast %8 : vector<1x192xf32> to vector<16x192xf32>
    %253 = arith.addf %251, %252 : vector<16x192xf32>
    %254 = vector.extract_strided_slice %248 {offsets = [0, 0], sizes = [16, 64], strides = [1, 1]} : vector<16x192xf32> to vector<16x64xf32>
    %255 = vector.extract_strided_slice %253 {offsets = [0, 0], sizes = [16, 64], strides = [1, 1]} : vector<16x192xf32> to vector<16x64xf32>
    %256 = arith.addf %254, %255 : vector<16x64xf32>
    %cst_70 = arith.constant 0.000000e+00 : f32
    %257 = vector.broadcast %cst_70 : f32 to vector<16x64xf32>
    %258 = arith.subf %257, %256 : vector<16x64xf32>
    %259 = math.exp %258 : vector<16x64xf32>
    %cst_71 = arith.constant 1.000000e+00 : f32
    %260 = vector.broadcast %cst_71 : f32 to vector<16x64xf32>
    %261 = arith.addf %260, %259 : vector<16x64xf32>
    %262 = tpu.reciprocal %261 {approx = true} : vector<16x64xf32> -> vector<16x64xf32>
    %263 = vector.extract_strided_slice %248 {offsets = [0, 64], sizes = [16, 64], strides = [1, 1]} : vector<16x192xf32> to vector<16x64xf32>
    %264 = vector.extract_strided_slice %253 {offsets = [0, 64], sizes = [16, 64], strides = [1, 1]} : vector<16x192xf32> to vector<16x64xf32>
    %265 = arith.addf %263, %264 : vector<16x64xf32>
    %cst_72 = arith.constant 0.000000e+00 : f32
    %266 = vector.broadcast %cst_72 : f32 to vector<16x64xf32>
    %267 = arith.subf %266, %265 : vector<16x64xf32>
    %268 = math.exp %267 : vector<16x64xf32>
    %cst_73 = arith.constant 1.000000e+00 : f32
    %269 = vector.broadcast %cst_73 : f32 to vector<16x64xf32>
    %270 = arith.addf %269, %268 : vector<16x64xf32>
    %271 = tpu.reciprocal %270 {approx = true} : vector<16x64xf32> -> vector<16x64xf32>
    %272 = vector.extract_strided_slice %248 {offsets = [0, 128], sizes = [16, 64], strides = [1, 1]} : vector<16x192xf32> to vector<16x64xf32>
    %273 = vector.extract_strided_slice %253 {offsets = [0, 128], sizes = [16, 64], strides = [1, 1]} : vector<16x192xf32> to vector<16x64xf32>
    %274 = arith.mulf %262, %273 : vector<16x64xf32>
    %275 = arith.addf %272, %274 : vector<16x64xf32>
    %276 = math.tanh %275 : vector<16x64xf32>
    %cst_74 = arith.constant 1.000000e+00 : f32
    %277 = vector.broadcast %cst_74 : f32 to vector<16x64xf32>
    %278 = arith.subf %277, %271 : vector<16x64xf32>
    %279 = arith.mulf %278, %276 : vector<16x64xf32>
    %280 = arith.mulf %271, %247 : vector<16x64xf32>
    %281 = arith.addf %279, %280 : vector<16x64xf32>
    %282 = vector.extract_strided_slice %281 {offsets = [0, 0], sizes = [16, 32], strides = [1, 1]} : vector<16x64xf32> to vector<16x32xf32>
    %283 = vector.extract_strided_slice %281 {offsets = [0, 32], sizes = [16, 32], strides = [1, 1]} : vector<16x64xf32> to vector<16x32xf32>
    %284 = arith.truncf %282 : vector<16x32xf32> to vector<16x32xbf16>
    %cst_75 = arith.constant dense<0.000000e+00> : vector<16x32xf32>
    %285 = tpu.matmul %2, %284, %cst_75 {dimension_numbers = #tpu.dot_dimension_numbers<[1], [0], [0], [1], [0, 0, 1, 1], [], []>} : vector<16x16xbf16>, vector<16x32xbf16>, vector<16x32xf32> -> vector<16x32xf32>
    %286 = arith.truncf %285 : vector<16x32xf32> to vector<16x32xbf16>
    %c0_76 = arith.constant 0 : index
    %c0_77 = arith.constant 0 : index
    %287 = vector.load %arg7[%c0_76, %c0_77] : memref<32x32xbf16, #tpu.memory_space<vmem>>, vector<32x32xbf16>
    %cst_78 = arith.constant dense<0.000000e+00> : vector<16x32xf32>
    %288 = tpu.matmul %286, %287, %cst_78 {dimension_numbers = #tpu.dot_dimension_numbers<[1], [0], [0], [1], [0, 0, 1, 1], [], []>} : vector<16x32xbf16>, vector<32x32xbf16>, vector<16x32xf32> -> vector<16x32xf32>
    %cst_79 = arith.constant 0.000000e+00 : f32
    %289 = vector.broadcast %cst_79 : f32 to vector<16x32xf32>
    %290 = arith.maximumf %288, %289 : vector<16x32xf32>
    %291 = vector.extract_strided_slice %1 {offsets = [112, 0], sizes = [16, 4], strides = [1, 1]} : vector<128x4xbf16> to vector<16x4xbf16>
    %cst_80 = arith.constant dense<0.000000e+00> : vector<16x4xf32>
    %292 = tpu.matmul %2, %291, %cst_80 {dimension_numbers = #tpu.dot_dimension_numbers<[1], [0], [0], [1], [0, 0, 1, 1], [], []>} : vector<16x16xbf16>, vector<16x4xbf16>, vector<16x4xf32> -> vector<16x4xf32>
    %293 = arith.truncf %292 : vector<16x4xf32> to vector<16x4xbf16>
    %c0_81 = arith.constant 0 : index
    %c0_82 = arith.constant 0 : index
    %294 = vector.load %arg8[%c0_81, %c0_82] : memref<4x32xbf16, #tpu.memory_space<vmem>>, vector<4x32xbf16>
    %cst_83 = arith.constant dense<0.000000e+00> : vector<16x32xf32>
    %295 = tpu.matmul %293, %294, %cst_83 {dimension_numbers = #tpu.dot_dimension_numbers<[1], [0], [0], [1], [0, 0, 1, 1], [], []>} : vector<16x4xbf16>, vector<4x32xbf16>, vector<16x32xf32> -> vector<16x32xf32>
    %cst_84 = arith.constant 0.000000e+00 : f32
    %296 = vector.broadcast %cst_84 : f32 to vector<16x32xf32>
    %297 = arith.maximumf %295, %296 : vector<16x32xf32>
    %c0_85 = arith.constant 0 : index
    %c0_86 = arith.constant 0 : index
    %298 = vector.load %arg9[%c0_85, %c0_86] : memref<96x16xbf16, #tpu.memory_space<vmem>>, vector<96x16xbf16>
    %299 = arith.truncf %290 : vector<16x32xf32> to vector<16x32xbf16>
    %300 = vector.extract_strided_slice %298 {offsets = [0, 0], sizes = [32, 16], strides = [1, 1]} : vector<96x16xbf16> to vector<32x16xbf16>
    %cst_87 = arith.constant dense<0.000000e+00> : vector<16x16xf32>
    %301 = tpu.matmul %299, %300, %cst_87 {dimension_numbers = #tpu.dot_dimension_numbers<[1], [0], [0], [1], [0, 0, 1, 1], [], []>} : vector<16x32xbf16>, vector<32x16xbf16>, vector<16x16xf32> -> vector<16x16xf32>
    %302 = arith.truncf %283 : vector<16x32xf32> to vector<16x32xbf16>
    %303 = vector.extract_strided_slice %298 {offsets = [32, 0], sizes = [32, 16], strides = [1, 1]} : vector<96x16xbf16> to vector<32x16xbf16>
    %cst_88 = arith.constant dense<0.000000e+00> : vector<16x16xf32>
    %304 = tpu.matmul %302, %303, %cst_88 {dimension_numbers = #tpu.dot_dimension_numbers<[1], [0], [0], [1], [0, 0, 1, 1], [], []>} : vector<16x32xbf16>, vector<32x16xbf16>, vector<16x16xf32> -> vector<16x16xf32>
    %305 = arith.addf %301, %304 : vector<16x16xf32>
    %306 = arith.truncf %297 : vector<16x32xf32> to vector<16x32xbf16>
    %307 = vector.extract_strided_slice %298 {offsets = [64, 0], sizes = [32, 16], strides = [1, 1]} : vector<96x16xbf16> to vector<32x16xbf16>
    %cst_89 = arith.constant dense<0.000000e+00> : vector<16x16xf32>
    %308 = tpu.matmul %306, %307, %cst_89 {dimension_numbers = #tpu.dot_dimension_numbers<[1], [0], [0], [1], [0, 0, 1, 1], [], []>} : vector<16x32xbf16>, vector<32x16xbf16>, vector<16x16xf32> -> vector<16x16xf32>
    %309 = arith.addf %305, %308 : vector<16x16xf32>
    %c0_90 = arith.constant 0 : index
    %c0_91 = arith.constant 0 : index
    %310 = vector.load %arg10[%c0_90, %c0_91] : memref<1x16xf32, #tpu.memory_space<vmem>>, vector<1x16xf32>
    %311 = vector.broadcast %310 : vector<1x16xf32> to vector<16x16xf32>
    %312 = arith.addf %309, %311 : vector<16x16xf32>
    %c0_92 = arith.constant 0 : index
    %c0_93 = arith.constant 0 : index
    %c0_94 = arith.constant 0 : index
    %313 = vector.load %arg11[%c0_92, %c0_93, %c0_94] : memref<1x16x16xf32, #tpu.memory_space<vmem>>, vector<1x16x16xf32>
    %314 = vector.shape_cast %313 : vector<1x16x16xf32> to vector<16x16xf32>
    %315 = vector.shape_cast %312 : vector<16x16xf32> to vector<1x16x16xf32>
    tpu.vector_store %arg11[%c0_92, %c0_93, %c0_94], %315 {strides = array<i32>} : memref<1x16x16xf32, #tpu.memory_space<vmem>>, vector<1x16x16xf32>,
    return
  }
  func.func @transform_0(%arg0: i32) -> (i32, i32) {
    %c0_i32 = arith.constant 0 : i32
    %c0_i32_0 = arith.constant 0 : i32
    %c0_i32_1 = arith.constant 0 : i32
    return %c0_i32, %c0_i32_0 : i32, i32
  }
  func.func @transform_1(%arg0: i32) -> (i32, i32, i32) {
    %c0_i32 = arith.constant 0 : i32
    %c0_i32_0 = arith.constant 0 : i32
    %c0_i32_1 = arith.constant 0 : i32
    return %arg0, %c0_i32, %c0_i32_0 : i32, i32, i32
  }
  func.func @transform_2(%arg0: i32) -> (i32, i32) {
    %c0_i32 = arith.constant 0 : i32
    %c0_i32_0 = arith.constant 0 : i32
    %c0_i32_1 = arith.constant 0 : i32
    return %c0_i32, %c0_i32_0 : i32, i32
  }
  func.func @transform_3(%arg0: i32) -> (i32, i32) {
    %c0_i32 = arith.constant 0 : i32
    %c0_i32_0 = arith.constant 0 : i32
    %c0_i32_1 = arith.constant 0 : i32
    return %c0_i32, %c0_i32_0 : i32, i32
  }
  func.func @transform_4(%arg0: i32) -> (i32, i32) {
    %c0_i32 = arith.constant 0 : i32
    %c0_i32_0 = arith.constant 0 : i32
    %c0_i32_1 = arith.constant 0 : i32
    return %c0_i32, %c0_i32_0 : i32, i32
  }
  func.func @transform_5(%arg0: i32) -> (i32, i32) {
    %c0_i32 = arith.constant 0 : i32
    %c0_i32_0 = arith.constant 0 : i32
    %c0_i32_1 = arith.constant 0 : i32
    return %c0_i32, %c0_i32_0 : i32, i32
  }
  func.func @transform_6(%arg0: i32) -> (i32, i32) {
    %c0_i32 = arith.constant 0 : i32
    %c0_i32_0 = arith.constant 0 : i32
    %c0_i32_1 = arith.constant 0 : i32
    return %c0_i32, %c0_i32_0 : i32, i32
  }
  func.func @transform_7(%arg0: i32) -> (i32, i32) {
    %c0_i32 = arith.constant 0 : i32
    %c0_i32_0 = arith.constant 0 : i32
    %c0_i32_1 = arith.constant 0 : i32
    return %c0_i32, %c0_i32_0 : i32, i32
  }
  func.func @transform_8(%arg0: i32) -> (i32, i32) {
    %c0_i32 = arith.constant 0 : i32
    %c0_i32_0 = arith.constant 0 : i32
    %c0_i32_1 = arith.constant 0 : i32
    return %c0_i32, %c0_i32_0 : i32, i32
  }
  func.func @transform_9(%arg0: i32) -> (i32, i32) {
    %c0_i32 = arith.constant 0 : i32
    %c0_i32_0 = arith.constant 0 : i32
    %c0_i32_1 = arith.constant 0 : i32
    return %c0_i32, %c0_i32_0 : i32, i32
  }
  func.func @transform_10(%arg0: i32) -> (i32, i32, i32) {
    %c0_i32 = arith.constant 0 : i32
    %c0_i32_0 = arith.constant 0 : i32
    %c0_i32_1 = arith.constant 0 : i32
    return %arg0, %c0_i32, %c0_i32_0 : i32, i32, i32
  }
}

</mosaic_0001>

<bundles_post_ra>
// kernel: forward.1
= control target key start
LH: loop header
LB: loop body
LE: loop exit
PB: predicated region body
PF: predicated region fallthrough
CT: control target
= control target key end

     0   :  { %s2116_s13 = smov 0   ;;  %s2538_s0 = inlined_call_operand.vmem [shape: bf16[16,16], index: 0, kind: input, shape index: {}]   ;;  %s2539_s1 = inlined_call_operand.vmem [shape: bf16[2,128,4], index: 1, kind: input, shape index: {}]   ;;  %s2540_s2 = inlined_call_operand.vmem [shape: bf16[4,192], index: 2, kind: input, shape index: {}]   ;;  %s2541_s3 = inlined_call_operand.vmem [shape: f32[1,192], index: 3, kind: input, shape index: {}]   ;;  %s2542_s4 = inlined_call_operand.vmem [shape: bf16[64,192], index: 4, kind: input, shape index: {}]   ;;  %s2543_s5 = inlined_call_operand.vmem [shape: f32[1,192], index: 5, kind: input, shape index: {}]   ;;  %s2544_s6 = inlined_call_operand.vmem [shape: bf16[32,32], index: 6, kind: input, shape index: {}]   ;;  %s2545_s7 = inlined_call_operand.vmem [shape: bf16[4,32], index: 7, kind: input, shape index: {}]   ;;  %s2546_s8 = inlined_call_operand.vmem [shape: bf16[96,16], index: 8, kind: input, shape index: {}]   ;;  %s2547_s9 = inlined_call_operand.vmem [shape: f32[1,16], index: 9, kind: input, shape index: {}]   ;;  %s2548_s10 = inlined_call_operand.vmem [shape: f32[2,16,16], index: 10, kind: output, shape index: {}]  }
   0x1 LB: > { %s1779_s14 = sadd.s32 4294967295, %s2054_s13   ;;  %p1783_p0 = scmp.ge.s32.totalorder %s2054_s13, 1  ;;  %s2054_s13 = sphi %s2116_s13, %s20_s13  }
   0x2   : > { %p312_p1 = scmp.lt.s32.totalorder %s2054_s13, 3 }
   0x4   : > { %p313_p2 = pnand %p1783_p0, %p312_p1 }
   0x5   : > { %v2127_v0 = vld [vmem:[%s2542_s4 + $0x4] ss:$8 sps:$4 sm:$0xff] (!%p313_p2)   ;;  %v2132_v1 = vld [vmem:[%s2542_s4] ss:$8 sps:$4 sm:$0xff] (!%p313_p2)   ;;  %v2056_v2 = vmov (!%p313_p2), 0   ;;  %p350_p3 = scmp.lt.s32.totalorder (!%p313_p2), %s1779_s14, 1  ;;  %v382_v13 = vlaneseq (!%p313_p2) }
   0x6   : > { %316 = sbr.rel (%p313_p2) target bundleno = 4665 (0x1239), region = 60  ;;  %505 = vmatprep.mubr.bf16.mxu0 (!%p313_p2), %v2056_v2  ;;  %682 = vmatprep.mubr.bf16.mxu1 (!%p313_p2), %v2056_v2  ;;  %v2140_v3 = vld [vmem:[%s2542_s4 + $0x14] ss:$8 sps:$4 sm:$0xff] (!%p313_p2)   ;;  %vm466_vm0 = vcmask (!%p313_p2), 1041408   ;;  %v2146_v4 = vld [vmem:[%s2542_s4 + $0x10] ss:$8 sps:$4 sm:$0xff] (!%p313_p2)  }
   0x7   : > { %650 = vmatprep.subr.bf16.mxu1 (!%p313_p2), %v2127_v0  ;;  %v2151_v5 = vld [vmem:[%s2542_s4 + $0x24] ss:$8 sps:$4 sm:$0xff] (!%p313_p2)   ;;  %v1796_v6 = vld.sshfl [vmem:[%s2540_s2] sm:$0x33 pattern:$0x76325410] (!%p313_p2) }
   0x8   : > { %651 = vmatpush1.bf16.msra.mxu1 (!%p313_p2), %v2132_v1  ;;  %v440_v7 = vcombine.high (!%p313_p2), %v1796_v6, %v1796_v6  ;;  %v468_v8 = vsel (!%p313_p2), %vm466_vm0, %v1796_v6, 0  ;;  %v2164_v9 = vld [vmem:[%s2542_s4 + $0x20] ss:$8 sps:$4 sm:$0xff] (!%p313_p2)   ;;  %v2169_v10 = vld [vmem:[%s2542_s4 + $0x34] ss:$8 sps:$4 sm:$0xff] (!%p313_p2)   ;;  %vm441_vm1 = vcmask (!%p313_p2), 31744  }
   0x9   : > { %652 = vmatprep.subr.bf16.mxu1 (!%p313_p2), %v2140_v3  ;;  %v2183_v12 = vld [vmem:[%s2542_s4 + $0x30] ss:$8 sps:$4 sm:$0xff] (!%p313_p2)   ;;  %v383_v14 = vshrl.u32 (!%p313_p2), %v382_v13, 7  ;;  %v380_v16 = vld [vmem:[%s2541_s3] sm:$0x3] (!%p313_p2)  ;;  %s2057_s23 = smov (!%p313_p2), 64  }
   0xa   : > { %1797 = vmatprep.subr.msk.bf16.mxu0 (!%p313_p2), %vm466_vm0, %v440_v7  ;;  %v586_v19 = vld [vmem:[%s2543_s5] sm:$0x3] (!%p313_p2)  ;;  %vm646_vm2 = vcmask (!%p313_p2), 523264   ;;  %vm2059_vm3 = vmmov (!%p313_p2), 0   ;;  %vm1325_vm4 = vcmask (!%p313_p2), 130048   ;;  %s2060_s30 = smov (!%p313_p2), 32  }
   0xb   : > { %474 = vmatpush1.bf16.msra.mxu0 (!%p313_p2), %v468_v8  ;;  %v384_v15 = vsub.s32 (!%p313_p2), 0, %v383_v14  ;;  %v388_v42 = vsub.s32 (!%p313_p2), 1, %v383_v14  ;;  %vm1387_vm5 = vcmask (!%p313_p2), 261120  }
   0xc   : > { %653 = vmatpush1.bf16.msra.mxu1 (!%p313_p2), %v2146_v4  ;;  %986 = vmatprep.subr.bf16.mxu0 (!%p313_p2), %v2127_v0 }
   0xd   : > { %s2550_s14 = smov (!%p350_p3, %s1779_s14), 1  ;;  %654 = vmatprep.subr.bf16.mxu1 %v2151_v5  ;;  %v2216_v20 = vrot.slane %v380_v16, %v384_v15  ;;  %v2218_v23 = vrot.slane %v586_v19, %v384_v15  ;;  %v2224_v43 = vrot.slane %v586_v19, %v388_v42  ;;  %v2226_v44 = vrot.slane %v380_v16, %v388_v42 }
   0xe   : > { %s1840_s27 = sshll.u32 %s2550_s14, 6 }
   0xf   : > { %s2174_s16 = scalar_lea.vmem %s2539_s1, %s1840_s27  ;;  %s1841_s27 = sshll.u32 %s2550_s14, 4 }
  0x10   : > { %v1934_v11 = vld [vmem:[%s2174_s16] sm:$0xff]   ;;  %655 = vmatpush1.bf16.msra.mxu1 %v2164_v9  ;;  %v1936_v55 = vld [vmem:[%s2174_s16 + $0x8] sm:$0xff]   ;;  %s359_s12 = scalar_lea.vmem %s2548_s10, %s1841_s27 }
  0x11   : > { %1798 = vmatmul.mubr.msk.bf16.vlgmr.msra.gmra.mrb[0].mxu0 %vm441_vm1, %v1934_v11  ;;  %656 = vmatprep.subr.bf16.mxu1 %v2169_v10 }
  0x12   : > { %515 = vmatprep.mubr.bf16.mxu0 %v2056_v2  ;;  %987 = vmatpush1.bf16.msra.mxu0 %v2132_v1 }
  0x13   : > { %988 = vmatprep.subr.bf16.mxu0 %v2140_v3 }
  0x14   : > { %657 = vmatpush1.bf16.msra.mxu1 %v2183_v12 }
  0x15   : > { %734 = vmatprep.subr.bf16.mxu1 %v2127_v0 }
  0x16   : > { %989 = vmatpush1.bf16.msra.mxu0 %v2146_v4 }
  0x17   : > { %683 = vmatmul.mubr.bf16.vlgmr.msra.gmra.mrb[0].mxu1 %v2056_v2  ;;  %990 = vmatprep.subr.bf16.mxu0 %v2151_v5 }
  0x18   : > { %735 = vmatpush1.bf16.msra.mxu1 %v2132_v1  ;;  %766 = vmatprep.mubr.bf16.mxu1 %v2056_v2 }
  0x19   : > { %736 = vmatprep.subr.bf16.mxu1 %v2140_v3  ;;  %1799 = vmatmul.mubr.msk.bf16.gmra.mrb[4].mxu0 %vm441_vm1, %v1936_v55 }
  0x1a   : > { %991 = vmatpush1.bf16.msra.mxu0 %v2164_v9  ;;  %525 = vmatprep.mubr.bf16.mxu0 %v2056_v2 }
  0x1b   : > { %992 = vmatprep.subr.bf16.mxu0 %v2169_v10 }
  0x1c   : > { %737 = vmatpush1.bf16.msra.mxu1 %v2146_v4 }
  0x1d   : > { %738 = vmatprep.subr.bf16.mxu1 %v2151_v5 }
  0x1e   : > { %993 = vmatpush1.bf16.msra.mxu0 %v2183_v12 }
  0x1f   : > { %1154 = vmatprep.subr.bf16.mxu0 %v2127_v0 }
  0x20   : > { %739 = vmatpush1.bf16.msra.mxu1 %v2164_v9 }
  0x21   : > { %740 = vmatprep.subr.bf16.mxu1 %v2169_v10 }
  0x24   : > { %741 = vmatpush1.bf16.msra.mxu1 %v2183_v12 }
  0x25   : > { %818 = vmatprep.subr.bf16.mxu1 %v2127_v0 }
  0xe4   : > { %v507_v17 = vpop.f32.mrb[0].mxu0 }
  0xe5   : > { %v509_v18 = vpop.f32.mrb[1].mxu0  ;;  %v508_v24 = vadd.f32 %v507_v17, %v2216_v20 }
  0xe6   : > { %v511_v21 = vpop.f32.mrb[2].mxu0  ;;  %v510_v47 = vadd.f32 %v509_v18, %v2226_v44 }
  0xe7   : > { %v513_v22 = vpop.f32.mrb[3].mxu0  ;;  %v512_v29 = vadd.f32 %v511_v21, %v2216_v20 }
  0xe8   : > { %v514_v51 = vadd.f32 %v513_v22, %v2226_v44 }
  0xea   : > { %v684_v25 = vpop.f32.mrb[0].mxu1 }
  0xeb   : > { %v685_v26 = vadd.f32 %v684_v25, %v2218_v23  ;;  %v686_v27 = vpop.f32.mrb[1].mxu1 }
  0xec   : > { %v688_v28 = vpop.f32.mrb[2].mxu1  ;;  %v687_v45 = vadd.f32 %v686_v27, %v2224_v43  ;;  %v517_v14 = vpop.f32.mrb[4].mxu0 }
  0xed   : > { %v693_v30 = vadd.f32 %v685_v26, %v508_v24  ;;  %v689_v31 = vadd.f32 %v688_v28, %v2218_v23  ;;  %v690_v32 = vpop.f32.mrb[3].mxu1  ;;  %v519_v15 = vpop.f32.mrb[5].mxu0  ;;  %v518_v19 = vadd.f32 %v517_v14, %v2216_v20 }
  0xee   : > { %v691_v49 = vadd.f32 %v690_v32, %v2224_v43  ;;  %v521_v16 = vpop.f32.mrb[6].mxu0 }
  0xef   : > { %v695_v33 = vsub.f32 0.0, %v693_v30  ;;  %v694_v34 = vadd.f32 %v689_v31, %v512_v29  ;;  %v523_v17 = vpop.f32.mrb[7].mxu0  ;;  %v522_v26 = vadd.f32 %v521_v16, %v2216_v20 }
  0xf1   : > { %v697_v35 = vmul.f32 1.442695, %v695_v33  ;;  %v696_v36 = vsub.f32 0.0, %v694_v34 }
  0xf3   : > { %1952 = vpow2.f32 %v697_v35  ;;  %v699_v37 = vmul.f32 1.442695, %v696_v36 }
  0xf5   : > { %1954 = vpow2.f32 %v699_v37 }
  0xfd   : > { %v1953_v38 = vpop.eup %1952 }
  0xfe   : > { %v701_v39 = vadd.f32 1.0, %v1953_v38 }
  0xff   : > { %v1955_v40 = vpop.eup %1954 }
 0x100   : > { %1956 = vrcp.f32 %v701_v39  ;;  %v702_v41 = vadd.f32 1.0, %v1955_v40 }
 0x102   : > { %1958 = vrcp.f32 %v702_v41  ;;  %v520_v41 = vadd.f32 %v519_v15, %v2226_v44 }
 0x10a   : > { %v1957_v46 = vpop.eup %1956 }
 0x10b   : > { %v705_v48 = vmul.f32 %v1957_v46, %v687_v45  ;;  %v711_v59 = vsub.f32 1.0, %v1957_v46  ;;  %v723_v63 = vmul.f32 0.0, %v1957_v46 }
 0x10c   : > { %v1959_v50 = vpop.eup %1958 }
 0x10d   : > { %v707_v52 = vadd.f32 %v705_v48, %v510_v47  ;;  %v706_v53 = vmul.f32 %v1959_v50, %v691_v49  ;;  %v712_v61 = vsub.f32 1.0, %v1959_v50  ;;  %v724_v6 = vmul.f32 0.0, %v1959_v50 }
 0x10e   : > { %v524_v47 = vadd.f32 %v523_v17, %v2226_v44 }
 0x10f   : > { %1960 = vtanh.f32 %v707_v52  ;;  %v708_v54 = vadd.f32 %v706_v53, %v514_v51  ;;  %v1937_v51 = vld [vmem:[%s2174_s16 + $0x10] sm:$0xff]  }
 0x110   : > { %1800 = vmatmul.mubr.msk.bf16.gmra.mrb[8].mxu0 %vm441_vm1, %v1937_v51 }
 0x111   : > { %1962 = vtanh.f32 %v708_v54  ;;  %535 = vmatprep.mubr.bf16.mxu0 %v2056_v2 }
 0x119   : > { %v1961_v56 = vpop.eup %1960 }
 0x11a   : > { %715 = vrot.lane.b32.xlu0 %v1961_v56, %s2057_s23 }
 0x11b   : > { %v1963_v57 = vpop.eup %1962 }
 0x11e   : > { %717 = vrot.lane.b32.xlu0 %v1963_v57, %s2057_s23 }
 0x18c   : > { %v716_v58 = vpop.permute.xlu0 %715 }
 0x18d   : > { %v721_v60 = vmul.f32 %v716_v58, %v711_v59 }
 0x18f   : > { %v2237_v8 = vadd.f32 %v723_v63, %v721_v60 }
 0x190   : > { %v718_v62 = vpop.permute.xlu0 %717 }
 0x191   : > { %v722_v7 = vmul.f32 %v718_v62, %v712_v61 }
 0x193   : > { %v2239_v11 = vadd.f32 %v724_v6, %v722_v7 }
 0x195   : > { %v727_v13 = vpack.c.bf16 %v2239_v11, %v2237_v8 }
 0x197   : > { %729 = vrot.lane.b32.xlu1 %v727_v13, %s2057_s23 }
 0x1e3   : > { %v527_v7 = vpop.f32.mrb[8].mxu0 }
 0x1e4   : > { %v529_v13 = vpop.f32.mrb[9].mxu0 }
 0x1e5   : > { %v531_v14 = vpop.f32.mrb[10].mxu0 }
 0x1e6   : > { %v533_v15 = vpop.f32.mrb[11].mxu0 }
 0x209   : > { %v730_v18 = vpop.permute.xlu1 %729 }
 0x20a   : > { %1814 = vmatmul.mubr.msk.bf16.vlgmr.msra.gmra.mrb[4].mxu1 %vm646_vm2, %v730_v18 }
 0x20b   : > { %819 = vmatpush1.bf16.msra.mxu1 %v2132_v1  ;;  %850 = vmatprep.mubr.bf16.mxu1 %v2056_v2 }
 0x20c   : > { %820 = vmatprep.subr.bf16.mxu1 %v2140_v3 }
 0x20f   : > { %821 = vmatpush1.bf16.msra.mxu1 %v2146_v4 }
 0x210   : > { %822 = vmatprep.subr.bf16.mxu1 %v2151_v5 }
 0x213   : > { %823 = vmatpush1.bf16.msra.mxu1 %v2164_v9 }
 0x214   : > { %824 = vmatprep.subr.bf16.mxu1 %v2169_v10 }
 0x217   : > { %825 = vmatpush1.bf16.msra.mxu1 %v2183_v12 }
 0x218   : > { %902 = vmatprep.subr.bf16.mxu1 %v2127_v0 }
 0x2dd   : > { %v768_v21 = vpop.f32.mrb[4].mxu1 }
 0x2de   : > { %v769_v22 = vadd.f32 %v768_v21, %v2218_v23  ;;  %v770_v24 = vpop.f32.mrb[5].mxu1  ;;  %v532_v21 = vadd.f32 %v531_v14, %v2216_v20 }
 0x2df   : > { %v772_v25 = vpop.f32.mrb[6].mxu1  ;;  %v771_v39 = vadd.f32 %v770_v24, %v2224_v43 }
 0x2e0   : > { %v777_v27 = vadd.f32 %v769_v22, %v518_v19  ;;  %v773_v28 = vadd.f32 %v772_v25, %v2218_v23  ;;  %v774_v29 = vpop.f32.mrb[7].mxu1 }
 0x2e1   : > { %v775_v45 = vadd.f32 %v774_v29, %v2224_v43 }
 0x2e2   : > { %v779_v30 = vsub.f32 0.0, %v777_v27  ;;  %v778_v31 = vadd.f32 %v773_v28, %v522_v26 }
 0x2e4   : > { %v781_v32 = vmul.f32 1.442695, %v779_v30  ;;  %v780_v33 = vsub.f32 0.0, %v778_v31 }
 0x2e6   : > { %1964 = vpow2.f32 %v781_v32  ;;  %v783_v34 = vmul.f32 1.442695, %v780_v33 }
 0x2e8   : > { %1966 = vpow2.f32 %v783_v34 }
 0x2f0   : > { %v1965_v35 = vpop.eup %1964 }
 0x2f1   : > { %v785_v36 = vadd.f32 1.0, %v1965_v35 }
 0x2f2   : > { %v1967_v37 = vpop.eup %1966 }
 0x2f3   : > { %1968 = vrcp.f32 %v785_v36  ;;  %v786_v38 = vadd.f32 1.0, %v1967_v37  ;;  %v530_v37 = vadd.f32 %v529_v13, %v2226_v44 }
 0x2f5   : > { %1970 = vrcp.f32 %v786_v38 }
 0x2fd   : > { %v1969_v40 = vpop.eup %1968 }
 0x2fe   : > { %v789_v42 = vmul.f32 %v1969_v40, %v771_v39  ;;  %v795_v54 = vsub.f32 1.0, %v1969_v40  ;;  %v807_v59 = vmul.f32 %v1969_v40, %v2237_v8  ;;  %v528_v8 = vadd.f32 %v527_v7, %v2216_v20 }
 0x2ff   : > { %v1971_v46 = vpop.eup %1970 }
 0x300   : > { %v791_v48 = vadd.f32 %v789_v42, %v520_v41  ;;  %v790_v49 = vmul.f32 %v1971_v46, %v775_v45  ;;  %v796_v57 = vsub.f32 1.0, %v1971_v46  ;;  %v808_v60 = vmul.f32 %v1971_v46, %v2239_v11 }
 0x301   : > { %v534_v41 = vadd.f32 %v533_v15, %v2226_v44 }
 0x302   : > { %1972 = vtanh.f32 %v791_v48  ;;  %v792_v50 = vadd.f32 %v790_v49, %v524_v47  ;;  %v1938_v47 = vld [vmem:[%s2174_s16 + $0x18] sm:$0xff]  }
 0x303   : > { %1801 = vmatmul.mubr.msk.bf16.gmra.mrb[12].mxu0 %vm441_vm1, %v1938_v47  ;;  %v2338_v47 = vld [vmem:[%s2174_s16 + $0x38] sm:$0xff]  }
 0x304   : > { %1974 = vtanh.f32 %v792_v50  ;;  %545 = vmatprep.mubr.bf16.mxu0 %v2056_v2 }
 0x30c   : > { %v1973_v52 = vpop.eup %1972 }
 0x30d   : > { %799 = vrot.lane.b32.xlu1 %v1973_v52, %s2057_s23 }
 0x30e   : > { %v1975_v53 = vpop.eup %1974 }
 0x30f   : > { %801 = vrot.lane.b32.xlu0 %v1975_v53, %s2057_s23 }
 0x37f   : > { %v800_v55 = vpop.permute.xlu1 %799 }
 0x380   : > { %v805_v56 = vmul.f32 %v800_v55, %v795_v54 }
 0x381   : > { %v802_v58 = vpop.permute.xlu0 %801 }
 0x382   : > { %v806_v61 = vmul.f32 %v802_v58, %v796_v57  ;;  %v2269_v62 = vadd.f32 %v807_v59, %v805_v56 }
 0x384   : > { %v2271_v63 = vadd.f32 %v808_v60, %v806_v61 }
 0x386   : > { %v811_v6 = vpack.c.bf16 %v2271_v63, %v2269_v62 }
 0x388   : > { %813 = vrot.lane.b32.xlu1 %v811_v6, %s2057_s23 }
 0x3d6   : > { %v537_v61 = vpop.f32.mrb[12].mxu0 }
 0x3d7   : > { %v539_v6 = vpop.f32.mrb[13].mxu0 }
 0x3d8   : > { %v541_v7 = vpop.f32.mrb[14].mxu0 }
 0x3d9   : > { %v543_v13 = vpop.f32.mrb[15].mxu0 }
 0x3fa   : > { %v814_v16 = vpop.permute.xlu1 %813 }
 0x3fb   : > { %1815 = vmatmul.mubr.msk.bf16.vlgmr.msra.gmra.mrb[8].mxu1 %vm646_vm2, %v814_v16 }
 0x3fc   : > { %903 = vmatpush1.bf16.msra.mxu1 %v2132_v1  ;;  %934 = vmatprep.mubr.bf16.mxu1 %v2056_v2 }
 0x3fd   : > { %904 = vmatprep.subr.bf16.mxu1 %v2140_v3 }
 0x400   : > { %905 = vmatpush1.bf16.msra.mxu1 %v2146_v4 }
 0x401   : > { %906 = vmatprep.subr.bf16.mxu1 %v2151_v5 }
 0x404   : > { %907 = vmatpush1.bf16.msra.mxu1 %v2164_v9 }
 0x405   : > { %908 = vmatprep.subr.bf16.mxu1 %v2169_v10 }
 0x408   : > { %909 = vmatpush1.bf16.msra.mxu1 %v2183_v12 }
 0x409   : > { %1070 = vmatprep.subr.bf16.mxu1 %v2127_v0 }
 0x4ce   : > { %v852_v11 = vpop.f32.mrb[8].mxu1 }
 0x4cf   : > { %v853_v17 = vadd.f32 %v852_v11, %v2218_v23  ;;  %v854_v18 = vpop.f32.mrb[9].mxu1  ;;  %v542_v11 = vadd.f32 %v541_v7, %v2216_v20 }
 0x4d0   : > { %v856_v19 = vpop.f32.mrb[10].mxu1  ;;  %v855_v35 = vadd.f32 %v854_v18, %v2224_v43 }
 0x4d1   : > { %v861_v22 = vadd.f32 %v853_v17, %v528_v8  ;;  %v857_v24 = vadd.f32 %v856_v19, %v2218_v23  ;;  %v858_v25 = vpop.f32.mrb[11].mxu1 }
 0x4d2   : > { %v859_v39 = vadd.f32 %v858_v25, %v2224_v43 }
 0x4d3   : > { %v863_v26 = vsub.f32 0.0, %v861_v22  ;;  %v862_v27 = vadd.f32 %v857_v24, %v532_v21 }
 0x4d5   : > { %v865_v28 = vmul.f32 1.442695, %v863_v26  ;;  %v864_v29 = vsub.f32 0.0, %v862_v27 }
 0x4d7   : > { %1976 = vpow2.f32 %v865_v28  ;;  %v867_v30 = vmul.f32 1.442695, %v864_v29 }
 0x4d9   : > { %1978 = vpow2.f32 %v867_v30 }
 0x4e1   : > { %v1977_v31 = vpop.eup %1976 }
 0x4e2   : > { %v869_v32 = vadd.f32 1.0, %v1977_v31 }
 0x4e3   : > { %v1979_v33 = vpop.eup %1978 }
 0x4e4   : > { %1980 = vrcp.f32 %v869_v32  ;;  %v870_v34 = vadd.f32 1.0, %v1979_v33  ;;  %v540_v32 = vadd.f32 %v539_v6, %v2226_v44 }
 0x4e6   : > { %1982 = vrcp.f32 %v870_v34 }
 0x4ee   : > { %v1981_v36 = vpop.eup %1980 }
 0x4ef   : > { %v873_v38 = vmul.f32 %v1981_v36, %v855_v35  ;;  %v879_v50 = vsub.f32 1.0, %v1981_v36  ;;  %v891_v55 = vmul.f32 %v1981_v36, %v2269_v62  ;;  %v538_v62 = vadd.f32 %v537_v61, %v2216_v20 }
 0x4f0   : > { %v1983_v40 = vpop.eup %1982  ;;  %v544_v36 = vadd.f32 %v543_v13, %v2226_v44 }
 0x4f1   : > { %v875_v42 = vadd.f32 %v873_v38, %v530_v37  ;;  %v874_v45 = vmul.f32 %v1983_v40, %v859_v39  ;;  %v880_v53 = vsub.f32 1.0, %v1983_v40  ;;  %v892_v56 = vmul.f32 %v1983_v40, %v2271_v63  ;;  %v1939_v40 = vld [vmem:[%s2174_s16 + $0x20] sm:$0xff]  }
 0x4f2   : > { %1802 = vmatmul.mubr.msk.bf16.gmra.mrb[16].mxu0 %vm441_vm1, %v1939_v40 }
 0x4f3   : > { %1984 = vtanh.f32 %v875_v42  ;;  %v876_v46 = vadd.f32 %v874_v45, %v534_v41  ;;  %555 = vmatprep.mubr.bf16.mxu0 %v2056_v2  ;;  %v1940_v45 = vld [vmem:[%s2174_s16 + $0x28] sm:$0xff]  }
 0x4f5   : > { %1986 = vtanh.f32 %v876_v46  ;;  %v1941_v46 = vld [vmem:[%s2174_s16 + $0x30] sm:$0xff]  }
 0x4fa   : > { %1803 = vmatmul.mubr.msk.bf16.gmra.mrb[20].mxu0 %vm441_vm1, %v1940_v45 }
 0x4fb   : > { %565 = vmatprep.mubr.bf16.mxu0 %v2056_v2 }
 0x4fd   : > { %v1985_v48 = vpop.eup %1984 }
 0x4fe   : > { %883 = vrot.lane.b32.xlu0 %v1985_v48, %s2057_s23 }
 0x4ff   : > { %v1987_v49 = vpop.eup %1986 }
 0x500   : > { %885 = vrot.lane.b32.xlu1 %v1987_v49, %s2057_s23 }
 0x502   : > { %1804 = vmatmul.mubr.msk.bf16.gmra.mrb[24].mxu0 %vm441_vm1, %v1941_v46 }
 0x503   : > { %575 = vmatprep.mubr.bf16.mxu0 %v2056_v2 }
 0x50a   : > { %1805 = vmatmul.mubr.msk.bf16.gmra.mrb[28].mxu0 %vm441_vm1, %v2338_v47 }
 0x50b   : > { %1018 = vmatprep.mubr.bf16.mxu0 %v2056_v2 }
 0x570   : > { %v884_v51 = vpop.permute.xlu0 %883 }
 0x571   : > { %v889_v52 = vmul.f32 %v884_v51, %v879_v50 }
 0x572   : > { %v886_v54 = vpop.permute.xlu1 %885 }
 0x573   : > { %v890_v57 = vmul.f32 %v886_v54, %v880_v53  ;;  %v2301_v58 = vadd.f32 %v891_v55, %v889_v52 }
 0x575   : > { %v2303_v59 = vadd.f32 %v892_v56, %v890_v57 }
 0x577   : > { %v895_v60 = vpack.c.bf16 %v2303_v59, %v2301_v58 }
 0x579   : > { %897 = vrot.lane.b32.xlu0 %v895_v60, %s2057_s23 }
 0x5c5   : > { %v547_v61 = vpop.f32.mrb[16].mxu0 }
 0x5c6   : > { %v549_v6 = vpop.f32.mrb[17].mxu0 }
 0x5c7   : > { %v551_v7 = vpop.f32.mrb[18].mxu0 }
 0x5c8   : > { %v553_v13 = vpop.f32.mrb[19].mxu0 }
 0x5eb   : > { %v898_v14 = vpop.permute.xlu0 %897 }
 0x5ec   : > { %1816 = vmatmul.mubr.msk.bf16.vlgmr.msra.gmra.mrb[12].mxu1 %vm646_vm2, %v898_v14  ;;  %v2352_v14 = vpop.f32.mrb[20].mxu0 }
 0x5ed   : > { %1071 = vmatpush1.bf16.msra.mxu1 %v2132_v1  ;;  %1102 = vmatprep.mubr.bf16.mxu1 %v2056_v2 }
 0x5ee   : > { %1072 = vmatprep.subr.bf16.mxu1 %v2140_v3 }
 0x5f1   : > { %1073 = vmatpush1.bf16.msra.mxu1 %v2146_v4 }
 0x5f2   : > { %1074 = vmatprep.subr.bf16.mxu1 %v2151_v5 }
 0x5f5   : > { %1075 = vmatpush1.bf16.msra.mxu1 %v2164_v9 }
 0x5f6   : > { %1076 = vmatprep.subr.bf16.mxu1 %v2169_v10 }
 0x5f9   : > { %1077 = vmatpush1.bf16.msra.mxu1 %v2183_v12 }
 0x5fa   : > { %1238 = vmatprep.subr.bf16.mxu1 %v2127_v0 }
 0x6bf   : > { %v936_v63 = vpop.f32.mrb[12].mxu1 }
 0x6c0   : > { %v937_v15 = vadd.f32 %v936_v63, %v2218_v23  ;;  %v938_v16 = vpop.f32.mrb[13].mxu1 }
 0x6c1   : > { %v940_v8 = vpop.f32.mrb[14].mxu1  ;;  %v939_v30 = vadd.f32 %v938_v16, %v2224_v43 }
 0x6c2   : > { %v945_v17 = vadd.f32 %v937_v15, %v538_v62  ;;  %v941_v18 = vadd.f32 %v940_v8, %v2218_v23  ;;  %v942_v19 = vpop.f32.mrb[15].mxu1  ;;  %v2354_v62 = vpop.f32.mrb[21].mxu0 }
 0x6c3   : > { %v943_v34 = vadd.f32 %v942_v19, %v2224_v43 }
 0x6c4   : > { %v947_v21 = vsub.f32 0.0, %v945_v17  ;;  %v946_v22 = vadd.f32 %v941_v18, %v542_v11 }
 0x6c6   : > { %v949_v24 = vmul.f32 1.442695, %v947_v21  ;;  %v948_v25 = vsub.f32 0.0, %v946_v22 }
 0x6c8   : > { %1988 = vpow2.f32 %v949_v24  ;;  %v951_v26 = vmul.f32 1.442695, %v948_v25  ;;  %v548_v24 = vadd.f32 %v547_v61, %v2216_v20 }
 0x6ca   : > { %1990 = vpow2.f32 %v951_v26 }
 0x6d2   : > { %v1989_v0 = vpop.eup %1988 }
 0x6d3   : > { %v953_v27 = vadd.f32 1.0, %v1989_v0 }
 0x6d4   : > { %v1991_v28 = vpop.eup %1990 }
 0x6d5   : > { %1992 = vrcp.f32 %v953_v27  ;;  %v954_v29 = vadd.f32 1.0, %v1991_v28  ;;  %v552_v27 = vadd.f32 %v551_v7, %v2216_v20 }
 0x6d7   : > { %1994 = vrcp.f32 %v954_v29 }
 0x6df   : > { %v1993_v31 = vpop.eup %1992 }
 0x6e0   : > { %v957_v33 = vmul.f32 %v1993_v31, %v939_v30  ;;  %v963_v48 = vsub.f32 1.0, %v1993_v31  ;;  %v975_v53 = vmul.f32 %v1993_v31, %v2301_v58  ;;  %v2356_v58 = vpop.f32.mrb[22].mxu0 }
 0x6e1   : > { %v1995_v35 = vpop.eup %1994 }
 0x6e2   : > { %v959_v37 = vadd.f32 %v957_v33, %v540_v32  ;;  %v958_v38 = vmul.f32 %v1995_v35, %v943_v34  ;;  %v964_v51 = vsub.f32 1.0, %v1995_v35  ;;  %v976_v54 = vmul.f32 %v1995_v35, %v2303_v59  ;;  %v2358_v59 = vpop.f32.mrb[23].mxu0 }
 0x6e3   : > { %v2360_v63 = vpop.f32.mrb[24].mxu0 }
 0x6e4   : > { %1996 = vtanh.f32 %v959_v37  ;;  %v960_v39 = vadd.f32 %v958_v38, %v544_v36  ;;  %v2362_v15 = vpop.f32.mrb[25].mxu0 }
 0x6e5   : > { %v2364_v16 = vpop.f32.mrb[26].mxu0 }
 0x6e6   : > { %1998 = vtanh.f32 %v960_v39  ;;  %v2366_v8 = vpop.f32.mrb[27].mxu0 }
 0x6e7   : > { %v2368_v11 = vpop.f32.mrb[28].mxu0 }
 0x6e8   : > { %v2370_v17 = vpop.f32.mrb[29].mxu0 }
 0x6e9   : > { %v2372_v18 = vpop.f32.mrb[30].mxu0 }
 0x6ea   : > { %v2374_v19 = vpop.f32.mrb[31].mxu0 }
 0x6ee   : > { %v1997_v41 = vpop.eup %1996 }
 0x6ef   : > { %967 = vrot.lane.b32.xlu1 %v1997_v41, %s2057_s23 }
 0x6f0   : > { %v1999_v42 = vpop.eup %1998 }
 0x6f1   : > { %969 = vrot.lane.b32.xlu0 %v1999_v42, %s2057_s23  ;;  %v550_v42 = vadd.f32 %v549_v6, %v2226_v44 }
 0x761   : > { %v968_v49 = vpop.permute.xlu1 %967 }
 0x762   : > { %v973_v50 = vmul.f32 %v968_v49, %v963_v48  ;;  %v554_v49 = vadd.f32 %v553_v13, %v2226_v44 }
 0x763   : > { %v970_v52 = vpop.permute.xlu0 %969 }
 0x764   : > { %v974_v55 = vmul.f32 %v970_v52, %v964_v51  ;;  %v2345_v56 = vadd.f32 %v975_v53, %v973_v50 }
 0x766   : > { %v2347_v57 = vadd.f32 %v976_v54, %v974_v55 }
 0x768   : > { %v979_v60 = vpack.c.bf16 %v2347_v57, %v2345_v56 }
 0x76a   : > { %981 = vrot.lane.b32.xlu1 %v979_v60, %s2057_s23 }
 0x7dc   : > { %v982_v21 = vpop.permute.xlu1 %981 }
 0x7dd   : > { %1817 = vmatmul.mubr.msk.bf16.vlgmr.msra.gmra.mrb[32].mxu0 %vm646_vm2, %v982_v21 }
 0x7de   : > { %1155 = vmatpush1.bf16.msra.mxu0 %v2132_v1  ;;  %1186 = vmatprep.mubr.bf16.mxu0 %v2056_v2 }
 0x7df   : > { %1156 = vmatprep.subr.bf16.mxu0 %v2140_v3 }
 0x7e2   : > { %1157 = vmatpush1.bf16.msra.mxu0 %v2146_v4 }
 0x7e3   : > { %1158 = vmatprep.subr.bf16.mxu0 %v2151_v5 }
 0x7e6   : > { %1159 = vmatpush1.bf16.msra.mxu0 %v2164_v9 }
 0x7e7   : > { %1160 = vmatprep.subr.bf16.mxu0 %v2169_v10 }
 0x7ea   : > { %1161 = vmatpush1.bf16.msra.mxu0 %v2183_v12 }
 0x8b0   : > { %v1020_v22 = vpop.f32.mrb[32].mxu0 }
 0x8b1   : > { %v1021_v25 = vadd.f32 %v1020_v22, %v2218_v23  ;;  %v1022_v26 = vpop.f32.mrb[33].mxu0 }
 0x8b2   : > { %v1024_v0 = vpop.f32.mrb[34].mxu0  ;;  %v1023_v40 = vadd.f32 %v1022_v26, %v2224_v43 }
 0x8b3   : > { %v1029_v28 = vadd.f32 %v1021_v25, %v548_v24  ;;  %v1025_v29 = vadd.f32 %v1024_v0, %v2218_v23  ;;  %v1026_v30 = vpop.f32.mrb[35].mxu0 }
 0x8b4   : > { %v1027_v46 = vadd.f32 %v1026_v30, %v2224_v43 }
 0x8b5   : > { %v1031_v31 = vsub.f32 0.0, %v1029_v28  ;;  %v1030_v32 = vadd.f32 %v1025_v29, %v552_v27 }
 0x8b7   : > { %v1033_v33 = vmul.f32 1.442695, %v1031_v31  ;;  %v1032_v34 = vsub.f32 0.0, %v1030_v32 }
 0x8b9   : > { %2000 = vpow2.f32 %v1033_v33  ;;  %v1035_v35 = vmul.f32 1.442695, %v1032_v34 }
 0x8bb   : > { %2002 = vpow2.f32 %v1035_v35  ;;  %v560_v35 = vadd.f32 %v2354_v62, %v2226_v44 }
 0x8c3   : > { %v2001_v36 = vpop.eup %2000 }
 0x8c4   : > { %v1037_v37 = vadd.f32 1.0, %v2001_v36 }
 0x8c5   : > { %v2003_v38 = vpop.eup %2002 }
 0x8c6   : > { %2004 = vrcp.f32 %v1037_v37  ;;  %v1038_v39 = vadd.f32 1.0, %v2003_v38 }
 0x8c8   : > { %2006 = vrcp.f32 %v1038_v39  ;;  %v564_v39 = vadd.f32 %v2358_v59, %v2226_v44 }
 0x8d0   : > { %v2005_v41 = vpop.eup %2004 }
 0x8d1   : > { %v1041_v45 = vmul.f32 %v2005_v41, %v1023_v40  ;;  %v1047_v55 = vsub.f32 1.0, %v2005_v41  ;;  %v1059_v21 = vmul.f32 %v2005_v41, %v2345_v56 }
 0x8d2   : > { %v2007_v48 = vpop.eup %2006 }
 0x8d3   : > { %v1043_v50 = vadd.f32 %v1041_v45, %v550_v42  ;;  %v1042_v51 = vmul.f32 %v2007_v48, %v1027_v46  ;;  %v1048_v6 = vsub.f32 1.0, %v2007_v48  ;;  %v1060_v13 = vmul.f32 %v2007_v48, %v2347_v57 }
 0x8d4   : > { %v558_v57 = vadd.f32 %v2352_v14, %v2216_v20 }
 0x8d5   : > { %2008 = vtanh.f32 %v1043_v50  ;;  %v1044_v52 = vadd.f32 %v1042_v51, %v554_v49 }
 0x8d7   : > { %2010 = vtanh.f32 %v1044_v52 }
 0x8df   : > { %v2009_v53 = vpop.eup %2008 }
 0x8e0   : > { %1051 = vrot.lane.b32.xlu0 %v2009_v53, %s2057_s23 }
 0x8e1   : > { %v2011_v54 = vpop.eup %2010 }
 0x8e2   : > { %1053 = vrot.lane.b32.xlu1 %v2011_v54, %s2057_s23 }
 0x952   : > { %v1052_v60 = vpop.permute.xlu0 %1051 }
 0x953   : > { %v1057_v61 = vmul.f32 %v1052_v60, %v1047_v55 }
 0x954   : > { %v1054_v7 = vpop.permute.xlu1 %1053 }
 0x955   : > { %v1058_v22 = vmul.f32 %v1054_v7, %v1048_v6  ;;  %v1061_v24 = vadd.f32 %v1059_v21, %v1057_v61  ;;  %v568_v7 = vadd.f32 %v2360_v63, %v2216_v20 }
 0x957   : > { %v1062_v25 = vadd.f32 %v1060_v13, %v1058_v22 }
 0x959   : > { %v1063_v26 = vpack.c.bf16 %v1062_v25, %v1061_v24 }
 0x95b   : > { %1065 = vrot.lane.b32.xlu0 %v1063_v26, %s2057_s23 }
 0x9cd   : > { %v1066_v0 = vpop.permute.xlu0 %1065 }
 0x9ce   : > { %1818 = vmatmul.mubr.msk.bf16.vlgmr.msra.gmra.mrb[16].mxu1 %vm646_vm2, %v1066_v0 }
 0x9cf   : > { %1239 = vmatpush1.bf16.msra.mxu1 %v2132_v1  ;;  %1270 = vmatprep.mubr.bf16.mxu1 %v2056_v2 }
 0x9d0   : > { %1240 = vmatprep.subr.bf16.mxu1 %v2140_v3  ;;  %v562_v3 = vadd.f32 %v2356_v58, %v2216_v20 }
 0x9d3   : > { %1241 = vmatpush1.bf16.msra.mxu1 %v2146_v4 }
 0x9d4   : > { %1242 = vmatprep.subr.bf16.mxu1 %v2151_v5 }
 0x9d7   : > { %1243 = vmatpush1.bf16.msra.mxu1 %v2164_v9 }
 0x9d8   : > { %1244 = vmatprep.subr.bf16.mxu1 %v2169_v10 }
 0x9db   : > { %1245 = vmatpush1.bf16.msra.mxu1 %v2183_v12 }
 0xaa1   : > { %v1104_v56 = vpop.f32.mrb[16].mxu1 }
 0xaa2   : > { %v1105_v1 = vadd.f32 %v1104_v56, %v2218_v23  ;;  %v1106_v27 = vpop.f32.mrb[17].mxu1 }
 0xaa3   : > { %v1108_v2 = vpop.f32.mrb[18].mxu1  ;;  %v1107_v34 = vadd.f32 %v1106_v27, %v2224_v43 }
 0xaa4   : > { %v1113_v4 = vadd.f32 %v1105_v1, %v558_v57  ;;  %v1109_v5 = vadd.f32 %v1108_v2, %v2218_v23  ;;  %v1110_v28 = vpop.f32.mrb[19].mxu1 }
 0xaa5   : > { %v1111_v37 = vadd.f32 %v1110_v28, %v2224_v43 }
 0xaa6   : > { %v1115_v9 = vsub.f32 0.0, %v1113_v4  ;;  %v1114_v29 = vadd.f32 %v1109_v5, %v562_v3 }
 0xaa8   : > { %v1117_v10 = vmul.f32 1.442695, %v1115_v9  ;;  %v1116_v30 = vsub.f32 0.0, %v1114_v29  ;;  %v570_v9 = vadd.f32 %v2362_v15, %v2226_v44 }
 0xaaa   : > { %2012 = vpow2.f32 %v1117_v10  ;;  %v1119_v12 = vmul.f32 1.442695, %v1116_v30 }
 0xaac   : > { %2014 = vpow2.f32 %v1119_v12  ;;  %v574_v12 = vadd.f32 %v2366_v8, %v2226_v44 }
 0xab4   : > { %v2013_v31 = vpop.eup %2012 }
 0xab5   : > { %v1121_v14 = vadd.f32 1.0, %v2013_v31 }
 0xab6   : > { %v2015_v32 = vpop.eup %2014 }
 0xab7   : > { %2016 = vrcp.f32 %v1121_v14  ;;  %v1122_v33 = vadd.f32 1.0, %v2015_v32 }
 0xab9   : > { %2018 = vrcp.f32 %v1122_v33 }
 0xac1   : > { %v2017_v58 = vpop.eup %2016 }
 0xac2   : > { %v1125_v36 = vmul.f32 %v2017_v58, %v1107_v34  ;;  %v1131_v48 = vsub.f32 1.0, %v2017_v58  ;;  %v1143_v52 = vmul.f32 %v2017_v58, %v1061_v24  ;;  %v572_v24 = vadd.f32 %v2364_v16, %v2216_v20 }
 0xac3   : > { %v2019_v38 = vpop.eup %2018 }
 0xac4   : > { %v1127_v40 = vadd.f32 %v1125_v36, %v560_v35  ;;  %v1126_v41 = vmul.f32 %v2019_v38, %v1111_v37  ;;  %v1132_v50 = vsub.f32 1.0, %v2019_v38  ;;  %v1144_v53 = vmul.f32 %v2019_v38, %v1062_v25 }
 0xac6   : > { %2020 = vtanh.f32 %v1127_v40  ;;  %v1128_v42 = vadd.f32 %v1126_v41, %v564_v39 }
 0xac8   : > { %2022 = vtanh.f32 %v1128_v42 }
 0xad0   : > { %v2021_v45 = vpop.eup %2020 }
 0xad1   : > { %1135 = vrot.lane.b32.xlu1 %v2021_v45, %s2057_s23 }
 0xad2   : > { %v2023_v46 = vpop.eup %2022 }
 0xad3   : > { %1137 = vrot.lane.b32.xlu0 %v2023_v46, %s2057_s23 }
 0xb43   : > { %v1136_v62 = vpop.permute.xlu1 %1135 }
 0xb44   : > { %v1141_v49 = vmul.f32 %v1136_v62, %v1131_v48  ;;  %v578_v48 = vadd.f32 %v2368_v11, %v2216_v20 }
 0xb45   : > { %v1138_v51 = vpop.permute.xlu0 %1137 }
 0xb46   : > { %v1142_v54 = vmul.f32 %v1138_v51, %v1132_v50  ;;  %v1145_v59 = vadd.f32 %v1143_v52, %v1141_v49  ;;  %v582_v51 = vadd.f32 %v2372_v18, %v2216_v20 }
 0xb48   : > { %v1146_v55 = vadd.f32 %v1144_v53, %v1142_v54 }
 0xb4a   : > { %v1147_v60 = vpack.c.bf16 %v1146_v55, %v1145_v59 }
 0xb4c   : > { %1149 = vrot.lane.b32.xlu1 %v1147_v60, %s2057_s23 }
 0xbbe   : > { %v1150_v61 = vpop.permute.xlu1 %1149 }
 0xbbf   : > { %1819 = vmatmul.mubr.msk.bf16.vlgmr.msra.gmra.mrb[36].mxu0 %vm646_vm2, %v1150_v61 }
 0xc92   : > { %v1188_v6 = vpop.f32.mrb[36].mxu0 }
 0xc93   : > { %v1189_v21 = vadd.f32 %v1188_v6, %v2218_v23  ;;  %v1190_v13 = vpop.f32.mrb[37].mxu0 }
 0xc94   : > { %v1192_v22 = vpop.f32.mrb[38].mxu0  ;;  %v1191_v28 = vadd.f32 %v1190_v13, %v2224_v43 }
 0xc95   : > { %v1197_v25 = vadd.f32 %v1189_v21, %v568_v7  ;;  %v1193_v26 = vadd.f32 %v1192_v22, %v2218_v23  ;;  %v1194_v0 = vpop.f32.mrb[39].mxu0 }
 0xc96   : > { %v1195_v10 = vadd.f32 %v1194_v0, %v2224_v43 }
 0xc97   : > { %v1199_v56 = vsub.f32 0.0, %v1197_v25  ;;  %v1198_v57 = vadd.f32 %v1193_v26, %v572_v24  ;;  %v584_v26 = vadd.f32 %v2374_v19, %v2226_v44 }
 0xc99   : > { %v1201_v1 = vmul.f32 1.442695, %v1199_v56  ;;  %v1200_v27 = vsub.f32 0.0, %v1198_v57 }
 0xc9b   : > { %2024 = vpow2.f32 %v1201_v1  ;;  %v1203_v2 = vmul.f32 1.442695, %v1200_v27  ;;  %v2058_v1 = vmov 0.0  }
 0xc9c   : > { %1874 = vmatprep.subr.bf16.mxu1 %v2058_v1  ;;  %1860 = vmatprep.subr.bf16.mxu0 %v2058_v1 }
 0xc9d   : > { %2026 = vpow2.f32 %v1203_v2  ;;  %1862 = vmatprep.mubr.msk.bf16.mxu0 %vm2059_vm3, %v2058_v1 }
 0xca5   : > { %v2025_v3 = vpop.eup %2024 }
 0xca6   : > { %v1205_v63 = vadd.f32 1.0, %v2025_v3 }
 0xca7   : > { %v2027_v4 = vpop.eup %2026 }
 0xca8   : > { %2028 = vrcp.f32 %v1205_v63  ;;  %v1206_v5 = vadd.f32 1.0, %v2027_v4 }
 0xcaa   : > { %2030 = vrcp.f32 %v1206_v5 }
 0xcb2   : > { %v2029_v16 = vpop.eup %2028 }
 0xcb3   : > { %v1209_v29 = vmul.f32 %v2029_v16, %v1191_v28  ;;  %v1215_v58 = vsub.f32 1.0, %v2029_v16  ;;  %v1227_v38 = vmul.f32 %v2029_v16, %v1145_v59 }
 0xcb4   : > { %v2031_v30 = vpop.eup %2030 }
 0xcb5   : > { %v1211_v31 = vadd.f32 %v1209_v29, %v570_v9  ;;  %v1210_v14 = vmul.f32 %v2031_v30, %v1195_v10  ;;  %v1216_v36 = vsub.f32 1.0, %v2031_v30  ;;  %v1228_v39 = vmul.f32 %v2031_v30, %v1146_v55 }
 0xcb7   : > { %2032 = vtanh.f32 %v1211_v31  ;;  %v1212_v32 = vadd.f32 %v1210_v14, %v574_v12 }
 0xcb9   : > { %2034 = vtanh.f32 %v1212_v32 }
 0xcc1   : > { %v2033_v33 = vpop.eup %2032 }
 0xcc2   : > { %1219 = vrot.lane.b32.xlu0 %v2033_v33, %s2057_s23 }
 0xcc3   : > { %v2035_v34 = vpop.eup %2034 }
 0xcc4   : > { %1221 = vrot.lane.b32.xlu1 %v2035_v34, %s2057_s23 }
 0xd34   : > { %v1220_v15 = vpop.permute.xlu0 %1219 }
 0xd35   : > { %v1225_v35 = vmul.f32 %v1220_v15, %v1215_v58  ;;  %v1946_v58 = vld [vmem:[%s2544_s6] sm:$0xff]   ;;  %v1947_v15 = vld [vmem:[%s2544_s6 + $0x8] sm:$0xff]  }
 0xd36   : > { %v1222_v37 = vpop.permute.xlu1 %1221 }
 0xd37   : > { %v1226_v40 = vmul.f32 %v1222_v37, %v1216_v36  ;;  %v2437_v8 = vadd.f32 %v1227_v38, %v1225_v35 }
 0xd39   : > { %v2439_v41 = vadd.f32 %v1228_v39, %v1226_v40  ;;  %v1477_v40 = vld [vmem:[%s2545_s7] sm:$0x3] }
 0xd3b   : > { %v1231_v42 = vpack.c.bf16 %v2439_v41, %v2437_v8 }
 0xd3d   : > { %1233 = vrot.lane.b32.xlu0 %v1231_v42, %s2057_s23 }
 0xdaf   : > { %v1234_v45 = vpop.permute.xlu0 %1233 }
 0xdb0   : > { %1820 = vmatmul.mubr.msk.bf16.vlgmr.msra.gmra.mrb[20].mxu1 %vm646_vm2, %v1234_v45 }
 0xdb1   : > { %1876 = vmatprep.mubr.msk.bf16.mxu1 %vm2059_vm3, %v2058_v1  ;;  %1875 = vmatpush3.bf16.msra.mxu1 %v2338_v47  ;;  %v1945_v47 = vld [vmem:[%s2546_s8 + $0x18] sm:$0xff]  }
 0xdb2   : > { %1886 = vmatprep.subr.bf16.mxu1 %v2058_v1 }
 0xe83   : > { %v1272_v46 = vpop.f32.mrb[20].mxu1 }
 0xe84   : > { %v1273_v62 = vadd.f32 %v1272_v46, %v2218_v23  ;;  %v1274_v49 = vpop.f32.mrb[21].mxu1  ;;  %v1482_v46 = vsel %vm466_vm0, %v1477_v40, 0 }
 0xe85   : > { %v1276_v50 = vpop.f32.mrb[22].mxu1  ;;  %v1275_v22 = vadd.f32 %v1274_v49, %v2224_v43  ;;  %v1950_v49 = vld [vmem:[%s2546_s8 + $0x20] sm:$0xff]  }
 0xe86   : > { %v1281_v52 = vadd.f32 %v1273_v62, %v578_v48  ;;  %v1277_v53 = vadd.f32 %v1276_v50, %v2218_v23  ;;  %v1278_v54 = vpop.f32.mrb[23].mxu1  ;;  %v580_v23 = vadd.f32 %v2370_v17, %v2226_v44  ;;  %v1944_v44 = vld [vmem:[%s2546_s8 + $0x10] sm:$0xff]   ;;  %v1948_v48 = vld [vmem:[%s2546_s8] sm:$0xff]   ;;  %v1949_v62 = vld [vmem:[%s2546_s8 + $0x8] sm:$0xff]  }
 0xe87   : > { %v1279_v24 = vadd.f32 %v1278_v54, %v2224_v43  ;;  %v1943_v43 = vld [vmem:[%s2538_s0] sm:$0xff]   ;;  %v1951_v50 = vld [vmem:[%s2546_s8 + $0x28] sm:$0xff]  }
 0xe88   : > { %v1283_v59 = vsub.f32 0.0, %v1281_v52  ;;  %v1282_v55 = vadd.f32 %v1277_v53, %v582_v51  ;;  %1877 = vmatmul.mubr.msk.bf16.vlgmr.msra.gmra.mrb[24].mxu1 %vm1325_vm4, %v1943_v43 }
 0xe89   : > { %1887 = vmatpush3.bf16.msra.mxu1 %v1944_v44  ;;  %1890 = vmatprep.mubr.msk.bf16.mxu1 %vm2059_vm3, %v2058_v1 }
 0xe8a   : > { %v1285_v60 = vmul.f32 1.442695, %v1283_v59  ;;  %v1284_v61 = vsub.f32 0.0, %v1282_v55  ;;  %1888 = vmatprep.subr.bf16.mxu1 %v2058_v1 }
 0xe8c   : > { %2036 = vpow2.f32 %v1285_v60  ;;  %v1287_v6 = vmul.f32 1.442695, %v1284_v61 }
 0xe8d   : > { %1889 = vmatpush3.bf16.msra.mxu1 %v1945_v47 }
 0xe8e   : > { %2038 = vpow2.f32 %v1287_v6  ;;  %1902 = vmatprep.subr.bf16.mxu1 %v2058_v1 }
 0xe96   : > { %v2037_v7 = vpop.eup %2036 }
 0xe97   : > { %v1289_v11 = vadd.f32 1.0, %v2037_v7 }
 0xe98   : > { %v2039_v21 = vpop.eup %2038 }
 0xe99   : > { %2040 = vrcp.f32 %v1289_v11  ;;  %v1290_v13 = vadd.f32 1.0, %v2039_v21 }
 0xe9b   : > { %2042 = vrcp.f32 %v1290_v13 }
 0xea3   : > { %v2041_v20 = vpop.eup %2040 }
 0xea4   : > { %v1293_v18 = vmul.f32 %v2041_v20, %v1275_v22  ;;  %v1299_v27 = vsub.f32 1.0, %v2041_v20  ;;  %v1311_v5 = vmul.f32 %v2041_v20, %v2437_v8 }
 0xea5   : > { %v2043_v25 = vpop.eup %2042 }
 0xea6   : > { %v1295_v0 = vadd.f32 %v1293_v18, %v580_v23  ;;  %v1294_v56 = vmul.f32 %v2043_v25, %v1279_v24  ;;  %v1300_v63 = vsub.f32 1.0, %v2043_v25  ;;  %v1312_v28 = vmul.f32 %v2043_v25, %v2439_v41 }
 0xea8   : > { %2044 = vtanh.f32 %v1295_v0  ;;  %v1296_v57 = vadd.f32 %v1294_v56, %v584_v26  ;;  %v1837_v56 = vld [vmem:[%s2547_s9] ss:$0 sm:$0xff] }
 0xeaa   : > { %2046 = vtanh.f32 %v1296_v57 }
 0xeb2   : > { %v2045_v17 = vpop.eup %2044 }
 0xeb3   : > { %1303 = vrot.lane.b32.xlu1 %v2045_v17, %s2057_s23 }
 0xeb4   : > { %v2047_v19 = vpop.eup %2046 }
 0xeb5   : > { %1305 = vrot.lane.b32.xlu0 %v2047_v19, %s2057_s23 }
 0xf25   : > { %v1304_v2 = vpop.permute.xlu1 %1303 }
 0xf26   : > { %v1309_v3 = vmul.f32 %v1304_v2, %v1299_v27 }
 0xf27   : > { %v1306_v4 = vpop.permute.xlu0 %1305 }
 0xf28   : > { %v1310_v16 = vmul.f32 %v1306_v4, %v1300_v63  ;;  %v1313_v9 = vadd.f32 %v1311_v5, %v1309_v3 }
 0xf2a   : > { %v1314_v29 = vadd.f32 %v1312_v28, %v1310_v16 }
 0xf2c   : > { %v1315_v10 = vpack.c.bf16 %v1314_v29, %v1313_v9 }
 0xf2e   : > { %1540 = vrot.lane.b32.xlu0 %v1315_v10, %s2060_s30  ;;  %1322 = vrot.lane.b32.xlu1 %v1315_v10, %s2057_s23 }
 0xf5b   : > { %v1469_v30 = vpop.f32.mrb[24].mxu1 }
 0xf5c   : > { %v1878_v12 = vpop.f32.mrb[25].mxu1 }
 0xf5d   : > { %v1472_v31 = vpop.f32.mrb[26].mxu1 }
 0xf5e   : > { %v1476_v14 = vpack.c.bf16 %v1472_v31, %v1469_v30  ;;  %v1879_v32 = vpop.f32.mrb[27].mxu1 }
 0xfa0   : > { %v1541_v33 = vpop.permute.xlu0 %1540  ;;  %v1323_v34 = vpop.permute.xlu1 %1322 }
 0xfa1   : > { %1861 = vmatpush3.bf16.msra.mxu0 %v1323_v34  ;;  %1891 = vmatmul.mubr.msk.bf16.vlgmr.msra.gmra.mrb[28].mxu1 %vm1387_vm5, %v1541_v33 }
 0xfa2   : > { %1866 = vmatprep.subr.bf16.mxu0 %v2058_v1  ;;  %1906 = vmatprep.mubr.msk.bf16.mxu1 %vm2059_vm3, %v2058_v1 }
 0xfa3   : > { %1903 = vmatpush3.bf16.msra.mxu1 %v1950_v49 }
 0xfa4   : > { %1863 = vmatmul.mubr.msk.bf16.vlgmr.msra.gmra.mrb[40].mxu0 %vm1325_vm4, %v1943_v43  ;;  %1904 = vmatprep.subr.bf16.mxu1 %v2058_v1 }
 0xfa5   : > { %1870 = vmatprep.mubr.msk.bf16.mxu0 %vm2059_vm3, %v2058_v1  ;;  %1867 = vmatpush3.bf16.msra.mxu0 %v1946_v58 }
 0xfa6   : > { %1868 = vmatprep.subr.bf16.mxu0 %v2058_v1 }
 0xfa7   : > { %1905 = vmatpush3.bf16.msra.mxu1 %v1951_v50 }
 0xfa9   : > { %1869 = vmatpush3.bf16.msra.mxu0 %v1947_v15 }
 0xfaa   : > { %1880 = vmatprep.subr.bf16.mxu0 %v2058_v1 }
0x1074   : > { %v1591_v35 = vpop.f32.mrb[28].mxu1 }
0x1075   : > { %v1892_v36 = vpop.f32.mrb[29].mxu1 }
0x1076   : > { %v1594_v37 = vpop.f32.mrb[30].mxu1 }
0x1077   : > { %v1363_v38 = vpop.f32.mrb[40].mxu0  ;;  %v1893_v39 = vpop.f32.mrb[31].mxu1 }
0x1078   : > { %v1864_v8 = vpop.f32.mrb[41].mxu0 }
0x1079   : > { %v1366_v41 = vpop.f32.mrb[42].mxu0 }
0x107a   : > { %v1370_v42 = vpack.c.bf16 %v1366_v41, %v1363_v38  ;;  %v1865_v45 = vpop.f32.mrb[43].mxu0 }
0x107c   : > { %1871 = vmatmul.mubr.msk.bf16.vlgmr.msra.gmra.mrb[44].mxu0 %vm1387_vm5, %v1370_v42 }
0x107d   : > { %1881 = vmatpush3.bf16.msra.mxu0 %v1482_v46  ;;  %1882 = vmatprep.mubr.msk.bf16.mxu0 %vm2059_vm3, %v2058_v1 }
0x107e   : > { %1894 = vmatprep.subr.bf16.mxu0 %v2058_v1 }
0x1084   : > { %1883 = vmatmul.mubr.msk.bf16.vlgmr.msra.gmra.mrb[48].mxu0 %vm441_vm1, %v1476_v14 }
0x1085   : > { %1898 = vmatprep.mubr.msk.bf16.mxu0 %vm2059_vm3, %v2058_v1  ;;  %1895 = vmatpush3.bf16.msra.mxu0 %v1948_v48 }
0x1086   : > { %1896 = vmatprep.subr.bf16.mxu0 %v2058_v1 }
0x1089   : > { %1897 = vmatpush3.bf16.msra.mxu0 %v1949_v62 }
0x114f   : > { %v1425_v51 = vpop.f32.mrb[44].mxu0 }
0x1150   : > { %v1872_v52 = vpop.f32.mrb[45].mxu0  ;;  %v1432_v54 = vmax.f32 %v1425_v51, 0.0 }
0x1151   : > { %v1428_v53 = vpop.f32.mrb[46].mxu0 }
0x1152   : > { %v1433_v59 = vmax.f32 %v1428_v53, 0.0  ;;  %v1873_v55 = vpop.f32.mrb[47].mxu0 }
0x1154   : > { %v1539_v60 = vpack.c.bf16 %v1433_v59, %v1432_v54 }
0x1156   : > { %1899 = vmatmul.mubr.msk.bf16.vlgmr.msra.gmra.mrb[52].mxu0 %vm1387_vm5, %v1539_v60 }
0x1157   : > { %v1518_v61 = vpop.f32.mrb[48].mxu0 }
0x1158   : > { %v1884_v6 = vpop.f32.mrb[49].mxu0  ;;  %v1525_v11 = vmax.f32 %v1518_v61, 0.0 }
0x1159   : > { %v1521_v7 = vpop.f32.mrb[50].mxu0 }
0x115a   : > { %v1526_v21 = vmax.f32 %v1521_v7, 0.0  ;;  %v1885_v13 = vpop.f32.mrb[51].mxu0 }
0x115c   : > { %v1654_v22 = vpack.c.bf16 %v1526_v21, %v1525_v11 }
0x115e   : > { %1907 = vmatmul.mubr.msk.bf16.vlgmr.msra.gmra.mrb[32].mxu1 %vm1387_vm5, %v1654_v22 }
0x1229   : > { %v1647_v20 = vpop.f32.mrb[52].mxu0 }
0x122a   : > { %v1648_v23 = vadd.f32 %v1647_v20, %v1591_v35  ;;  %v1900_v18 = vpop.f32.mrb[53].mxu0 }
0x122b   : > { %v1650_v24 = vpop.f32.mrb[54].mxu0 }
0x122c   : > { %v1651_v25 = vadd.f32 %v1650_v24, %v1594_v37  ;;  %v1901_v26 = vpop.f32.mrb[55].mxu0 }
0x1231   : > { %v1704_v0 = vpop.f32.mrb[32].mxu1 }
0x1232   : > { %v1711_v57 = vadd.f32 %v1704_v0, %v1648_v23  ;;  %v1908_v1 = vpop.f32.mrb[33].mxu1 }
0x1233   : > { %v1707_v43 = vpop.f32.mrb[34].mxu1 }
0x1234   : > { %v1720_v44 = vadd.f32 %v1837_v56, %v1711_v57  ;;  %v1712_v17 = vadd.f32 %v1707_v43, %v1651_v25  ;;  %v1909_v19 = vpop.f32.mrb[35].mxu1 }
0x1236   : > { %1722 = vst.msk [vmem:[%s359_s12] sm:$0xff] %vm1325_vm4, %v1720_v44  ;;  %v1721_v47 = vadd.f32 %v1837_v56, %v1712_v17 }
0x1238   : > { %1723 = vst.msk [vmem:[%s359_s12 + $0x8] sm:$0xff] %vm1325_vm4, %v1721_v47 }
0x1239 PF: > { %s20_s13 = sadd.s32 1, %s2054_s13  }
0x123a   : > { %p17_p4 = scmp.ge.s32.totalorder %s20_s13, 4  }
0x123c   :  { %19 = sbr.rel (!%p17_p4) target bundleno = 1 (0x1), region = 90 }

</bundles_post_ra>
